<compile_context>
chip_gen: v6e
topology: v6e:2x2x1
jax: 0.10.0
libtpu: 0.0.40
codegen_flags: <defaults>
</compile_context>

<pallas_src>
import math
import numpy as np
import jax
import jax.numpy as jnp
from jax import lax
from jax.experimental import pallas as pl
from jax.experimental.pallas import tpu as pltpu

EPS = 1e-5


# ----------------------------------------------------------------------------
# Pallas kernel: whole ResBlock forward in the folded lane-dense layout.
# Single grid point, everything resident in VMEM (problem is tiny).
# ----------------------------------------------------------------------------
def resblock_kernel(x_ref, emb_ref,
                    wgb1_ref, g1_ref, gt1_ref, wband1_ref,
                    wgb2_ref, g2_ref, gt2_ref, wband2_ref,
                    wskip_ref, sup_ref, sdn_ref,
                    o_ref):
    nh, wci = x_ref.shape                      # (N*H, W*Ci)
    ci = g1_ref.shape[1]
    w = wci // ci
    inv_cnt = 1.0 / float(nh * w)              # 1 / (N*H*W)

    x = x_ref[...]                             # (NH, W*Ci) folded input
    emb = emb_ref[...]                         # (NH, E)    row-expanded embedding
    sup = sup_ref[...]                         # (NH, NH)   y-1 shift (zero rows at y==0)
    sdn = sdn_ref[...]                         # (NH, NH)   y+1 shift (zero rows at y==H-1)

    def ada_bn_relu(h, wgb_ref, g_ref, gt_ref):
        # training-mode BatchNorm2d(affine=False) + per-sample adaptive affine + ReLU
        g = g_ref[...]                         # (W*C, C): fold columns -> channels
        gt = gt_ref[...]                       # (C, W*C): unfold channels -> columns
        c = g.shape[1]
        # one-pass stats: sum and sum-of-squares, var = E[x^2] - mean^2
        mean_c = jnp.dot(jnp.sum(h, axis=0, keepdims=True), g,
                         preferred_element_type=jnp.float32) * inv_cnt      # (1, C)
        esq_c = jnp.dot(jnp.sum(h * h, axis=0, keepdims=True), g,
                        preferred_element_type=jnp.float32) * inv_cnt       # (1, C)
        var_c = esq_c - mean_c * mean_c
        scale_c = lax.rsqrt(var_c + EPS)                                    # (1, C)
        # fused adaptive affine: gamma|beta from one matmul
        gb = jnp.dot(emb, wgb_ref[...],
                     preferred_element_type=jnp.float32)                    # (NH, 2C)
        a = (gb[:, :c] + 1.0) * scale_c                                     # (NH, C)
        b = gb[:, c:] - a * mean_c                                          # (NH, C)
        a_full = jnp.dot(a, gt, preferred_element_type=jnp.float32)         # (NH, W*C)
        b_full = jnp.dot(b, gt, preferred_element_type=jnp.float32)
        # y = (gamma+1)*(h-mean)*rsqrt(var+eps) + beta  ==  a_full*h + b_full
        return jnp.maximum(a_full * h + b_full, 0.0)

    def conv3x3(h, wband_ref):
        # 3x3 conv, padding=1, no bias, in the folded layout:
        #   row taps (y-1, y, y+1) via shift matrices (masking the y padding /
        #   batch boundaries), x taps folded into the offline banded weight.
        wc = h.shape[1]
        wband = wband_ref[...]                                              # (3*W*Cin, W*Cout)
        up = jnp.dot(sup, h, preferred_element_type=jnp.float32)            # rows y-1
        dn = jnp.dot(sdn, h, preferred_element_type=jnp.float32)            # rows y+1
        acc = jnp.dot(up, wband[0:wc, :], preferred_element_type=jnp.float32)
        acc = acc + jnp.dot(h, wband[wc:2 * wc, :],
                            preferred_element_type=jnp.float32)
        acc = acc + jnp.dot(dn, wband[2 * wc:3 * wc, :],
                            preferred_element_type=jnp.float32)
        return acc                                                          # (NH, W*Cout)

    out = ada_bn_relu(x, wgb1_ref, g1_ref, gt1_ref)      # norm1 + relu
    out = conv3x3(out, wband1_ref)                       # conv1
    out = ada_bn_relu(out, wgb2_ref, g2_ref, gt2_ref)    # norm2 + relu
    out = conv3x3(out, wband2_ref)                       # conv2
    # skip: 1x1 conv on the ORIGINAL input (block-diagonal weight), no bias
    skip = jnp.dot(x, wskip_ref[...], preferred_element_type=jnp.float32)
    o_ref[...] = out + skip                              # (NH, W*Co): lane-dense store


# ----------------------------------------------------------------------------
# Wrapper (NCHW in / NCHW out, like the PyTorch module)
# ----------------------------------------------------------------------------
def resblock_pallas(x_nchw, embed, kernel_params):
    (wgb1, g1, gt1, wband1, wgb2, g2, gt2, wband2, wskip_big, sup, sdn) = kernel_params
    n, ci, h, w = x_nchw.shape
    co = g2.shape[1]
    e = embed.shape[1]
    nh = n * h

    # single fused transpose+reshape into the lane-dense folded layout
    x2d = jnp.transpose(x_nchw, (0, 2, 3, 1)).reshape(nh, w * ci)
    # row-expanded embedding: row n*H+y uses embed[n]
    emb_exp = jnp.broadcast_to(embed[:, None, :], (n, h, e)).reshape(nh, e)

    args = (x2d, emb_exp, wgb1, g1, gt1, wband1, wgb2, g2, gt2, wband2,
            wskip_big, sup, sdn)
    cost = pl.CostEstimate(
        flops=int(2 * n * h * w * co * (9 * ci + 9 * co + ci)
                  + 4 * nh * e * (ci + co)),
        transcendentals=int(ci + co),
        bytes_accessed=int(sum(int(a.size) * 4 for a in args) + nh * w * co * 4),
    )

    vmem = pl.BlockSpec(memory_space=pltpu.MemorySpace.VMEM)
    out2d = pl.pallas_call(
        resblock_kernel,
        out_shape=jax.ShapeDtypeStruct((nh, w * co), jnp.float32),
        in_specs=[vmem] * len(args),
        out_specs=vmem,
        cost_estimate=cost,
    )(*args)

    return jnp.transpose(out2d.reshape(n, h, w, co), (0, 3, 1, 2))


# ----------------------------------------------------------------------------
# Deterministic parameter setup (xavier_uniform(gain=sqrt(2)) + spectral norm)
# and offline construction of the folded-layout constant matrices.
# ----------------------------------------------------------------------------
def xavier_uniform(key, shape, fan_in, fan_out, gain=math.sqrt(2.0)):
    bound = gain * math.sqrt(6.0 / (fan_in + fan_out))
    return jax.random.uniform(key, shape, jnp.float32, -bound, bound)


def spectral_normalize(wt, iters=30):
    """Divide by the largest singular value of wt.reshape(out, -1) (power iter)."""
    w2d = wt.reshape(wt.shape[0], -1)
    v = jnp.ones((w2d.shape[1],), jnp.float32)
    v = v / jnp.linalg.norm(v)
    u = jnp.ones((w2d.shape[0],), jnp.float32)
    for _ in range(iters):
        u = w2d @ v
        u = u / (jnp.linalg.norm(u) + 1e-12)
        v = w2d.T @ u
        v = v / (jnp.linalg.norm(v) + 1e-12)
    sigma = u @ (w2d @ v)
    return wt / sigma


def banded_conv_weight(w_hwio, w_spatial):
    """(3,3,Cin,Cout) -> (3*W*Cin, W*Cout) banded im2col weight for the folded
    (N*H, W*C) layout.  Row blocks: ky=0 (y-1 rows), ky=1 (y), ky=2 (y+1);
    the x-direction taps and x zero-padding are encoded in the band."""
    kh, kw, cin, cout = w_hwio.shape
    wnp = np.asarray(w_hwio, np.float32)
    wb = np.zeros((kh * w_spatial * cin, w_spatial * cout), np.float32)
    for ky in range(kh):
        for kx in range(kw):
            for x in range(w_spatial):
                u = x + kx - 1                     # input column group (padding=1)
                if 0 <= u < w_spatial:
                    wb[(ky * w_spatial + u) * cin:(ky * w_spatial + u + 1) * cin,
                       x * cout:(x + 1) * cout] = wnp[ky, kx]
    return wb


def make_params(key, cin, cout, edim, n, h, w):
    ks = jax.random.split(key, 7)
    # Adaptive BN linears: torch weight (C, E); stored as (E, C) so gamma = emb @ W
    wg1 = spectral_normalize(xavier_uniform(ks[0], (cin, edim), edim, cin)).T
    wb1 = spectral_normalize(xavier_uniform(ks[1], (cin, edim), edim, cin)).T
    wg2 = spectral_normalize(xavier_uniform(ks[2], (cout, edim), edim, cout)).T
    wb2 = spectral_normalize(xavier_uniform(ks[3], (cout, edim), edim, cout)).T
    # conv1 / conv2 / skip in OIHW (torch layout) for init + spectral norm
    w1_oihw = spectral_normalize(
        xavier_uniform(ks[4], (cout, cin, 3, 3), cin * 9, cout * 9))
    w2_oihw = spectral_normalize(
        xavier_uniform(ks[5], (cout, cout, 3, 3), cout * 9, cout * 9))
    wskip_oihw = spectral_normalize(
        xavier_uniform(ks[6], (cout, cin, 1, 1), cin, cout))

    torch_params = (wg1, wb1, w1_oihw, wg2, wb2, w2_oihw, wskip_oihw)

    # --- kernel-side (folded-layout) parameters, built offline ---------------
    w1_hwio = np.asarray(jnp.transpose(w1_oihw, (2, 3, 1, 0)))      # (3,3,Ci,Co)
    w2_hwio = np.asarray(jnp.transpose(w2_oihw, (2, 3, 1, 0)))      # (3,3,Co,Co)
    wskip_io = np.asarray(wskip_oihw[:, :, 0, 0].T)                 # (Ci, Co)

    g1 = np.kron(np.ones((w, 1), np.float32), np.eye(cin, dtype=np.float32))
    g2 = np.kron(np.ones((w, 1), np.float32), np.eye(cout, dtype=np.float32))
    sup = np.kron(np.eye(n, dtype=np.float32),
                  np.eye(h, k=-1, dtype=np.float32))                # y-1 shift, batch-blocked
    sdn = np.kron(np.eye(n, dtype=np.float32),
                  np.eye(h, k=1, dtype=np.float32))                 # y+1 shift

    kernel_params = (
        jnp.concatenate([wg1, wb1], axis=1),                        # (E, 2*Ci) fused BN linear
        jnp.asarray(g1), jnp.asarray(g1.T),
        jnp.asarray(banded_conv_weight(w1_hwio, w)),                # (3*W*Ci, W*Co)
        jnp.concatenate([wg2, wb2], axis=1),                        # (E, 2*Co) fused BN linear
        jnp.asarray(g2), jnp.asarray(g2.T),
        jnp.asarray(banded_conv_weight(w2_hwio, w)),                # (3*W*Co, W*Co)
        jnp.asarray(np.kron(np.eye(w, dtype=np.float32), wskip_io)),  # (W*Ci, W*Co) 1x1 skip
        jnp.asarray(sup), jnp.asarray(sdn),
    )
    return kernel_params, torch_params


# ----------------------------------------------------------------------------
# Pure-JAX reference (mirrors the PyTorch forward, training-mode batchnorm)
# ----------------------------------------------------------------------------
def resblock_ref(x, embed, torch_params):
    wg1, wb1, w1, wg2, wb2, w2, wskip = torch_params

    def adabn(hh, wg, wb):
        mean = hh.mean(axis=(0, 2, 3), keepdims=True)
        var = ((hh - mean) ** 2).mean(axis=(0, 2, 3), keepdims=True)
        hn = (hh - mean) / jnp.sqrt(var + EPS)
        gamma = embed @ wg
        beta = embed @ wb
        return (gamma + 1.0)[:, :, None, None] * hn + beta[:, :, None, None]

    def conv(hh, wt, pad):
        return lax.conv_general_dilated(
            hh, wt, window_strides=(1, 1), padding=pad,
            dimension_numbers=('NCHW', 'OIHW', 'NCHW'))

    out = adabn(x, wg1, wb1)
    out = jax.nn.relu(out)
    out = conv(out, w1, 'SAME')
    out = adabn(out, wg2, wb2)
    out = jax.nn.relu(out)
    out = conv(out, w2, 'SAME')
    skip = conv(x, wskip, 'VALID')
    return out + skip


# ----------------------------------------------------------------------------
if __name__ == "__main__":
    N, Cin, Cout, H, W, E = 2, 4, 8, 16, 16, 32

    key = jax.random.PRNGKey(0)
    k_x, k_e, k_p = jax.random.split(key, 3)
    x = jax.random.normal(k_x, (N, Cin, H, W), jnp.float32)     # NCHW like torch
    embed = jax.random.normal(k_e, (N, E), jnp.float32)

    kernel_params, torch_params = make_params(k_p, Cin, Cout, E, N, H, W)

    out = jax.block_until_ready(resblock_pallas(x, embed, kernel_params))
    ref = jax.block_until_ready(resblock_ref(x, embed, torch_params))
    np.testing.assert_allclose(np.asarray(out), np.asarray(ref),
                               rtol=5e-4, atol=5e-4)

    print("KERNEL_OK")
</pallas_src>

<mosaic_0001>
module attributes {stable_mosaic.version = 11 : i64} {
  func.func @resblock_kernel(%arg0: memref<32x64xf32, #tpu.memory_space<vmem>>, %arg1: memref<32x32xf32, #tpu.memory_space<vmem>>, %arg2: memref<32x8xf32, #tpu.memory_space<vmem>>, %arg3: memref<64x4xf32, #tpu.memory_space<vmem>>, %arg4: memref<4x64xf32, #tpu.memory_space<vmem>>, %arg5: memref<192x128xf32, #tpu.memory_space<vmem>>, %arg6: memref<32x16xf32, #tpu.memory_space<vmem>>, %arg7: memref<128x8xf32, #tpu.memory_space<vmem>>, %arg8: memref<8x128xf32, #tpu.memory_space<vmem>>, %arg9: memref<384x128xf32, #tpu.memory_space<vmem>>, %arg10: memref<64x128xf32, #tpu.memory_space<vmem>>, %arg11: memref<32x32xf32, #tpu.memory_space<vmem>>, %arg12: memref<32x32xf32, #tpu.memory_space<vmem>>, %arg13: memref<32x128xf32, #tpu.memory_space<vmem>>) attributes {dimension_semantics = [], scalar_prefetch = 0 : i64, scratch_operands = 0 : i64, tpu.core_type = #tpu.core_type<tc>} {
    %c0 = arith.constant 0 : index
    %c0_0 = arith.constant 0 : index
    %0 = vector.load %arg0[%c0, %c0_0] : memref<32x64xf32, #tpu.memory_space<vmem>>, vector<32x64xf32>
    %c0_1 = arith.constant 0 : index
    %c0_2 = arith.constant 0 : index
    %1 = vector.load %arg1[%c0_1, %c0_2] : memref<32x32xf32, #tpu.memory_space<vmem>>, vector<32x32xf32>
    %c0_3 = arith.constant 0 : index
    %c0_4 = arith.constant 0 : index
    %2 = vector.load %arg11[%c0_3, %c0_4] : memref<32x32xf32, #tpu.memory_space<vmem>>, vector<32x32xf32>
    %c0_5 = arith.constant 0 : index
    %c0_6 = arith.constant 0 : index
    %3 = vector.load %arg12[%c0_5, %c0_6] : memref<32x32xf32, #tpu.memory_space<vmem>>, vector<32x32xf32>
    %c0_7 = arith.constant 0 : index
    %c0_8 = arith.constant 0 : index
    %4 = vector.load %arg3[%c0_7, %c0_8] : memref<64x4xf32, #tpu.memory_space<vmem>>, vector<64x4xf32>
    %c0_9 = arith.constant 0 : index
    %c0_10 = arith.constant 0 : index
    %5 = vector.load %arg4[%c0_9, %c0_10] : memref<4x64xf32, #tpu.memory_space<vmem>>, vector<4x64xf32>
    %cst = arith.constant dense<0.000000e+00> : vector<64xf32>
    %6 = vector.multi_reduction <add>, %0, %cst [0] : vector<32x64xf32> to vector<64xf32>
    %7 = vector.shape_cast %6 : vector<64xf32> to vector<1x64xf32>
    %cst_11 = arith.constant dense<0.000000e+00> : vector<1x4xf32>
    %8 = tpu.matmul %7, %4, %cst_11 {dimension_numbers = #tpu.dot_dimension_numbers<[1], [0], [0], [1], [0, 0, 1, 1], [], []>} : vector<1x64xf32>, vector<64x4xf32>, vector<1x4xf32> -> vector<1x4xf32>
    %cst_12 = arith.constant 0.001953125 : f32
    %9 = vector.broadcast %cst_12 : f32 to vector<1x4xf32>
    %10 = arith.mulf %8, %9 : vector<1x4xf32>
    %11 = arith.mulf %0, %0 : vector<32x64xf32>
    %cst_13 = arith.constant dense<0.000000e+00> : vector<64xf32>
    %12 = vector.multi_reduction <add>, %11, %cst_13 [0] : vector<32x64xf32> to vector<64xf32>
    %13 = vector.shape_cast %12 : vector<64xf32> to vector<1x64xf32>
    %cst_14 = arith.constant dense<0.000000e+00> : vector<1x4xf32>
    %14 = tpu.matmul %13, %4, %cst_14 {dimension_numbers = #tpu.dot_dimension_numbers<[1], [0], [0], [1], [0, 0, 1, 1], [], []>} : vector<1x64xf32>, vector<64x4xf32>, vector<1x4xf32> -> vector<1x4xf32>
    %cst_15 = arith.constant 0.001953125 : f32
    %15 = vector.broadcast %cst_15 : f32 to vector<1x4xf32>
    %16 = arith.mulf %14, %15 : vector<1x4xf32>
    %17 = arith.mulf %10, %10 : vector<1x4xf32>
    %18 = arith.subf %16, %17 : vector<1x4xf32>
    %cst_16 = arith.constant 9.99999974E-6 : f32
    %19 = vector.broadcast %cst_16 : f32 to vector<1x4xf32>
    %20 = arith.addf %18, %19 : vector<1x4xf32>
    %21 = math.rsqrt %20 : vector<1x4xf32>
    %c0_17 = arith.constant 0 : index
    %c0_18 = arith.constant 0 : index
    %22 = vector.load %arg2[%c0_17, %c0_18] : memref<32x8xf32, #tpu.memory_space<vmem>>, vector<32x8xf32>
    %cst_19 = arith.constant dense<0.000000e+00> : vector<32x8xf32>
    %23 = tpu.matmul %1, %22, %cst_19 {dimension_numbers = #tpu.dot_dimension_numbers<[1], [0], [0], [1], [0, 0, 1, 1], [], []>} : vector<32x32xf32>, vector<32x8xf32>, vector<32x8xf32> -> vector<32x8xf32>
    %24 = vector.extract_strided_slice %23 {offsets = [0, 0], sizes = [32, 4], strides = [1, 1]} : vector<32x8xf32> to vector<32x4xf32>
    %cst_20 = arith.constant 1.000000e+00 : f32
    %25 = vector.broadcast %cst_20 : f32 to vector<32x4xf32>
    %26 = arith.addf %24, %25 : vector<32x4xf32>
    %27 = vector.broadcast %21 : vector<1x4xf32> to vector<32x4xf32>
    %28 = arith.mulf %26, %27 : vector<32x4xf32>
    %29 = vector.extract_strided_slice %23 {offsets = [0, 4], sizes = [32, 4], strides = [1, 1]} : vector<32x8xf32> to vector<32x4xf32>
    %30 = vector.broadcast %10 : vector<1x4xf32> to vector<32x4xf32>
    %31 = arith.mulf %28, %30 : vector<32x4xf32>
    %32 = arith.subf %29, %31 : vector<32x4xf32>
    %cst_21 = arith.constant dense<0.000000e+00> : vector<32x64xf32>
    %33 = tpu.matmul %28, %5, %cst_21 {dimension_numbers = #tpu.dot_dimension_numbers<[1], [0], [0], [1], [0, 0, 1, 1], [], []>} : vector<32x4xf32>, vector<4x64xf32>, vector<32x64xf32> -> vector<32x64xf32>
    %cst_22 = arith.constant dense<0.000000e+00> : vector<32x64xf32>
    %34 = tpu.matmul %32, %5, %cst_22 {dimension_numbers = #tpu.dot_dimension_numbers<[1], [0], [0], [1], [0, 0, 1, 1], [], []>} : vector<32x4xf32>, vector<4x64xf32>, vector<32x64xf32> -> vector<32x64xf32>
    %35 = arith.mulf %33, %0 : vector<32x64xf32>
    %36 = arith.addf %35, %34 : vector<32x64xf32>
    %cst_23 = arith.constant 0.000000e+00 : f32
    %37 = vector.broadcast %cst_23 : f32 to vector<32x64xf32>
    %38 = arith.maximumf %36, %37 : vector<32x64xf32>
    %c0_24 = arith.constant 0 : index
    %c0_25 = arith.constant 0 : index
    %39 = vector.load %arg5[%c0_24, %c0_25] : memref<192x128xf32, #tpu.memory_space<vmem>>, vector<192x128xf32>
    %cst_26 = arith.constant dense<0.000000e+00> : vector<32x64xf32>
    %40 = tpu.matmul %2, %38, %cst_26 {dimension_numbers = #tpu.dot_dimension_numbers<[1], [0], [0], [1], [0, 0, 1, 1], [], []>} : vector<32x32xf32>, vector<32x64xf32>, vector<32x64xf32> -> vector<32x64xf32>
    %cst_27 = arith.constant dense<0.000000e+00> : vector<32x64xf32>
    %41 = tpu.matmul %3, %38, %cst_27 {dimension_numbers = #tpu.dot_dimension_numbers<[1], [0], [0], [1], [0, 0, 1, 1], [], []>} : vector<32x32xf32>, vector<32x64xf32>, vector<32x64xf32> -> vector<32x64xf32>
    %42 = vector.extract_strided_slice %39 {offsets = [0, 0], sizes = [64, 128], strides = [1, 1]} : vector<192x128xf32> to vector<64x128xf32>
    %cst_28 = arith.constant dense<0.000000e+00> : vector<32x128xf32>
    %43 = tpu.matmul %40, %42, %cst_28 {dimension_numbers = #tpu.dot_dimension_numbers<[1], [0], [0], [1], [0, 0, 1, 1], [], []>} : vector<32x64xf32>, vector<64x128xf32>, vector<32x128xf32> -> vector<32x128xf32>
    %44 = vector.extract_strided_slice %39 {offsets = [64, 0], sizes = [64, 128], strides = [1, 1]} : vector<192x128xf32> to vector<64x128xf32>
    %cst_29 = arith.constant dense<0.000000e+00> : vector<32x128xf32>
    %45 = tpu.matmul %38, %44, %cst_29 {dimension_numbers = #tpu.dot_dimension_numbers<[1], [0], [0], [1], [0, 0, 1, 1], [], []>} : vector<32x64xf32>, vector<64x128xf32>, vector<32x128xf32> -> vector<32x128xf32>
    %46 = arith.addf %43, %45 : vector<32x128xf32>
    %47 = vector.extract_strided_slice %39 {offsets = [128, 0], sizes = [64, 128], strides = [1, 1]} : vector<192x128xf32> to vector<64x128xf32>
    %cst_30 = arith.constant dense<0.000000e+00> : vector<32x128xf32>
    %48 = tpu.matmul %41, %47, %cst_30 {dimension_numbers = #tpu.dot_dimension_numbers<[1], [0], [0], [1], [0, 0, 1, 1], [], []>} : vector<32x64xf32>, vector<64x128xf32>, vector<32x128xf32> -> vector<32x128xf32>
    %49 = arith.addf %46, %48 : vector<32x128xf32>
    %c0_31 = arith.constant 0 : index
    %c0_32 = arith.constant 0 : index
    %50 = vector.load %arg7[%c0_31, %c0_32] : memref<128x8xf32, #tpu.memory_space<vmem>>, vector<128x8xf32>
    %c0_33 = arith.constant 0 : index
    %c0_34 = arith.constant 0 : index
    %51 = vector.load %arg8[%c0_33, %c0_34] : memref<8x128xf32, #tpu.memory_space<vmem>>, vector<8x128xf32>
    %cst_35 = arith.constant dense<0.000000e+00> : vector<128xf32>
    %52 = vector.multi_reduction <add>, %49, %cst_35 [0] : vector<32x128xf32> to vector<128xf32>
    %53 = vector.shape_cast %52 : vector<128xf32> to vector<1x128xf32>
    %cst_36 = arith.constant dense<0.000000e+00> : vector<1x8xf32>
    %54 = tpu.matmul %53, %50, %cst_36 {dimension_numbers = #tpu.dot_dimension_numbers<[1], [0], [0], [1], [0, 0, 1, 1], [], []>} : vector<1x128xf32>, vector<128x8xf32>, vector<1x8xf32> -> vector<1x8xf32>
    %cst_37 = arith.constant 0.001953125 : f32
    %55 = vector.broadcast %cst_37 : f32 to vector<1x8xf32>
    %56 = arith.mulf %54, %55 : vector<1x8xf32>
    %57 = arith.mulf %49, %49 : vector<32x128xf32>
    %cst_38 = arith.constant dense<0.000000e+00> : vector<128xf32>
    %58 = vector.multi_reduction <add>, %57, %cst_38 [0] : vector<32x128xf32> to vector<128xf32>
    %59 = vector.shape_cast %58 : vector<128xf32> to vector<1x128xf32>
    %cst_39 = arith.constant dense<0.000000e+00> : vector<1x8xf32>
    %60 = tpu.matmul %59, %50, %cst_39 {dimension_numbers = #tpu.dot_dimension_numbers<[1], [0], [0], [1], [0, 0, 1, 1], [], []>} : vector<1x128xf32>, vector<128x8xf32>, vector<1x8xf32> -> vector<1x8xf32>
    %cst_40 = arith.constant 0.001953125 : f32
    %61 = vector.broadcast %cst_40 : f32 to vector<1x8xf32>
    %62 = arith.mulf %60, %61 : vector<1x8xf32>
    %63 = arith.mulf %56, %56 : vector<1x8xf32>
    %64 = arith.subf %62, %63 : vector<1x8xf32>
    %cst_41 = arith.constant 9.99999974E-6 : f32
    %65 = vector.broadcast %cst_41 : f32 to vector<1x8xf32>
    %66 = arith.addf %64, %65 : vector<1x8xf32>
    %67 = math.rsqrt %66 : vector<1x8xf32>
    %c0_42 = arith.constant 0 : index
    %c0_43 = arith.constant 0 : index
    %68 = vector.load %arg6[%c0_42, %c0_43] : memref<32x16xf32, #tpu.memory_space<vmem>>, vector<32x16xf32>
    %cst_44 = arith.constant dense<0.000000e+00> : vector<32x16xf32>
    %69 = tpu.matmul %1, %68, %cst_44 {dimension_numbers = #tpu.dot_dimension_numbers<[1], [0], [0], [1], [0, 0, 1, 1], [], []>} : vector<32x32xf32>, vector<32x16xf32>, vector<32x16xf32> -> vector<32x16xf32>
    %70 = vector.extract_strided_slice %69 {offsets = [0, 0], sizes = [32, 8], strides = [1, 1]} : vector<32x16xf32> to vector<32x8xf32>
    %cst_45 = arith.constant 1.000000e+00 : f32
    %71 = vector.broadcast %cst_45 : f32 to vector<32x8xf32>
    %72 = arith.addf %70, %71 : vector<32x8xf32>
    %73 = vector.broadcast %67 : vector<1x8xf32> to vector<32x8xf32>
    %74 = arith.mulf %72, %73 : vector<32x8xf32>
    %75 = vector.extract_strided_slice %69 {offsets = [0, 8], sizes = [32, 8], strides = [1, 1]} : vector<32x16xf32> to vector<32x8xf32>
    %76 = vector.broadcast %56 : vector<1x8xf32> to vector<32x8xf32>
    %77 = arith.mulf %74, %76 : vector<32x8xf32>
    %78 = arith.subf %75, %77 : vector<32x8xf32>
    %cst_46 = arith.constant dense<0.000000e+00> : vector<32x128xf32>
    %79 = tpu.matmul %74, %51, %cst_46 {dimension_numbers = #tpu.dot_dimension_numbers<[1], [0], [0], [1], [0, 0, 1, 1], [], []>} : vector<32x8xf32>, vector<8x128xf32>, vector<32x128xf32> -> vector<32x128xf32>
    %cst_47 = arith.constant dense<0.000000e+00> : vector<32x128xf32>
    %80 = tpu.matmul %78, %51, %cst_47 {dimension_numbers = #tpu.dot_dimension_numbers<[1], [0], [0], [1], [0, 0, 1, 1], [], []>} : vector<32x8xf32>, vector<8x128xf32>, vector<32x128xf32> -> vector<32x128xf32>
    %81 = arith.mulf %79, %49 : vector<32x128xf32>
    %82 = arith.addf %81, %80 : vector<32x128xf32>
    %cst_48 = arith.constant 0.000000e+00 : f32
    %83 = vector.broadcast %cst_48 : f32 to vector<32x128xf32>
    %84 = arith.maximumf %82, %83 : vector<32x128xf32>
    %c0_49 = arith.constant 0 : index
    %c0_50 = arith.constant 0 : index
    %85 = vector.load %arg9[%c0_49, %c0_50] : memref<384x128xf32, #tpu.memory_space<vmem>>, vector<384x128xf32>
    %cst_51 = arith.constant dense<0.000000e+00> : vector<32x128xf32>
    %86 = tpu.matmul %2, %84, %cst_51 {dimension_numbers = #tpu.dot_dimension_numbers<[1], [0], [0], [1], [0, 0, 1, 1], [], []>} : vector<32x32xf32>, vector<32x128xf32>, vector<32x128xf32> -> vector<32x128xf32>
    %cst_52 = arith.constant dense<0.000000e+00> : vector<32x128xf32>
    %87 = tpu.matmul %3, %84, %cst_52 {dimension_numbers = #tpu.dot_dimension_numbers<[1], [0], [0], [1], [0, 0, 1, 1], [], []>} : vector<32x32xf32>, vector<32x128xf32>, vector<32x128xf32> -> vector<32x128xf32>
    %88 = vector.extract_strided_slice %85 {offsets = [0, 0], sizes = [128, 128], strides = [1, 1]} : vector<384x128xf32> to vector<128x128xf32>
    %cst_53 = arith.constant dense<0.000000e+00> : vector<32x128xf32>
    %89 = tpu.matmul %86, %88, %cst_53 {dimension_numbers = #tpu.dot_dimension_numbers<[1], [0], [0], [1], [0, 0, 1, 1], [], []>} : vector<32x128xf32>, vector<128x128xf32>, vector<32x128xf32> -> vector<32x128xf32>
    %90 = vector.extract_strided_slice %85 {offsets = [128, 0], sizes = [128, 128], strides = [1, 1]} : vector<384x128xf32> to vector<128x128xf32>
    %cst_54 = arith.constant dense<0.000000e+00> : vector<32x128xf32>
    %91 = tpu.matmul %84, %90, %cst_54 {dimension_numbers = #tpu.dot_dimension_numbers<[1], [0], [0], [1], [0, 0, 1, 1], [], []>} : vector<32x128xf32>, vector<128x128xf32>, vector<32x128xf32> -> vector<32x128xf32>
    %92 = arith.addf %89, %91 : vector<32x128xf32>
    %93 = vector.extract_strided_slice %85 {offsets = [256, 0], sizes = [128, 128], strides = [1, 1]} : vector<384x128xf32> to vector<128x128xf32>
    %cst_55 = arith.constant dense<0.000000e+00> : vector<32x128xf32>
    %94 = tpu.matmul %87, %93, %cst_55 {dimension_numbers = #tpu.dot_dimension_numbers<[1], [0], [0], [1], [0, 0, 1, 1], [], []>} : vector<32x128xf32>, vector<128x128xf32>, vector<32x128xf32> -> vector<32x128xf32>
    %95 = arith.addf %92, %94 : vector<32x128xf32>
    %c0_56 = arith.constant 0 : index
    %c0_57 = arith.constant 0 : index
    %96 = vector.load %arg10[%c0_56, %c0_57] : memref<64x128xf32, #tpu.memory_space<vmem>>, vector<64x128xf32>
    %cst_58 = arith.constant dense<0.000000e+00> : vector<32x128xf32>
    %97 = tpu.matmul %0, %96, %cst_58 {dimension_numbers = #tpu.dot_dimension_numbers<[1], [0], [0], [1], [0, 0, 1, 1], [], []>} : vector<32x64xf32>, vector<64x128xf32>, vector<32x128xf32> -> vector<32x128xf32>
    %98 = arith.addf %95, %97 : vector<32x128xf32>
    %c0_59 = arith.constant 0 : index
    %c0_60 = arith.constant 0 : index
    %99 = vector.load %arg13[%c0_59, %c0_60] : memref<32x128xf32, #tpu.memory_space<vmem>>, vector<32x128xf32>
    tpu.vector_store %arg13[%c0_59, %c0_60], %98 {strides = array<i32>} : memref<32x128xf32, #tpu.memory_space<vmem>>, vector<32x128xf32>,
    return
  }
}

</mosaic_0001>

<bundles_post_ra>
// kernel: tpu_custom_call.1
= control target key start
LH: loop header
LB: loop body
LE: loop exit
PB: predicated region body
PF: predicated region fallthrough
CT: control target
= control target key end

     0   :  { %18 = vsyncpa [#allocation3], 0  ;;  %s3782_s0 = inlined_call_operand.vmem [shape: f32[32,64], index: 0, kind: input, shape index: {}]   ;;  %s3783_s1 = inlined_call_operand.hbm [shape: f32[32,32], index: 1, kind: input, shape index: {}]   ;;  %s3784_s2 = inlined_call_operand.vmem [shape: f32[32,8], index: 2, kind: input, shape index: {}]   ;;  %s3785_s3 = inlined_call_operand.vmem [shape: f32[64,4], index: 3, kind: input, shape index: {}]   ;;  %s3786_s4 = inlined_call_operand.hbm [shape: f32[4,64], index: 4, kind: input, shape index: {}]   ;;  %s3787_s5 = inlined_call_operand.vmem [shape: f32[192,128], index: 5, kind: input, shape index: {}]   ;;  %s3788_s6 = inlined_call_operand.vmem [shape: f32[32,16], index: 6, kind: input, shape index: {}]   ;;  %s3789_s7 = inlined_call_operand.vmem [shape: f32[128,8], index: 7, kind: input, shape index: {}]   ;;  %s3790_s8 = inlined_call_operand.vmem [shape: f32[8,128], index: 8, kind: input, shape index: {}]   ;;  %s3791_s9 = inlined_call_operand.hbm [shape: f32[384,128], index: 9, kind: input, shape index: {}]   ;;  %s3792_s10 = inlined_call_operand.vmem [shape: f32[64,128], index: 10, kind: input, shape index: {}]   ;;  %s3793_s11 = inlined_call_operand.hbm [shape: f32[32,32], index: 11, kind: input, shape index: {}]   ;;  %s3794_s12 = inlined_call_operand.hbm [shape: f32[32,32], index: 12, kind: input, shape index: {}]   ;;  %s3795_s13 = inlined_call_operand.hbm [shape: f32[32,128], index: 13, kind: output, shape index: {}]  }
   0x1   :  { %19 = vsyncpa [#allocation6], 0 }
   0x2   :  { %20 = vsyncpa [#allocation9], 0 }
   0x3   :  { %21 = vsyncpa [#allocation4], 0  ;;  %s3194_s25 = smov [#allocation5]  }
   0x4   :  { %s46_s26 = sshll.u32 %s3194_s25, 4  ;;  %s47_s26 = int_to_ptr.vmem [resolvable:$true] %s46_s26 }
   0x5   :  { %s3074_s27 = scalar_lea.vmem %s47_s26, 64  ;;  %p3079_p1 = scmp.lt.s32.totalorder %s47_s26, %s47_s26 }
   0x6   :  { %p3075_p0 = scmp.ne.s32.totalorder %s47_s26, %s3074_s27  ;;  %p3080_p2 = scmp.lt.s32.totalorder %s3074_s27, %s3074_s27 }
   0x8   :  { %p3081_p3 = por %p3080_p2, %p3079_p1 }
   0xa   :  { %p3082_p4 = pnand %p3081_p3, %p3075_p0 }
   0xc   :  { %3085 = shalt.err (!%p3082_p4)
}
   0xd   :  { %49 = dma.hbm_to_vmem [thread:$0]  %s3786_s4, 64, %s47_s26, [#allocation6]  }
   0xe   :  { %s3195_s30 = smov [#allocation8]   ;;  %s3196_s15 = smov [#allocation2]  }
   0xf   :  { %s77_s14 = sshll.u32 %s3195_s30, 4  ;;  %s29_s16 = sshll.u32 %s3196_s15, 4  ;;  %s78_s14 = int_to_ptr.vmem [resolvable:$true] %s77_s14  ;;  %s30_s16 = int_to_ptr.vmem [resolvable:$true] %s29_s16 }
  0x10   :  { %s3094_s17 = scalar_lea.vmem %s78_s14, 512  ;;  %p3099_p6 = scmp.lt.s32.totalorder %s78_s14, %s78_s14 }
  0x11   :  { %p3095_p5 = scmp.ne.s32.totalorder %s78_s14, %s3094_s17  ;;  %p3100_p7 = scmp.lt.s32.totalorder %s3094_s17, %s3094_s17 }
  0x13   :  { %p3101_p8 = por %p3100_p7, %p3099_p6 }
  0x15   :  { %p3102_p9 = pnand %p3101_p8, %p3095_p5 }
  0x17   :  { %3105 = shalt.err (!%p3102_p9)
}
  0x18   :  { %s3197_s18 = smov 128   ;;  %s3198_s19 = smov 8  }
  0x19   :  { %83 = dma.hbm_to_vmem [thread:$0]  %s3793_s11, 512, %s78_s14, [#allocation9], %s3197_s18, %s3197_s18, %s3198_s19  }
  0x1a   :  { %s3114_s4 = scalar_lea.vmem %s30_s16, 512  ;;  %p3119_p11 = scmp.lt.s32.totalorder %s30_s16, %s30_s16 }
  0x1b   :  { %p3115_p10 = scmp.ne.s32.totalorder %s30_s16, %s3114_s4  ;;  %p3120_p12 = scmp.lt.s32.totalorder %s3114_s4, %s3114_s4 }
  0x1d   :  { %p3121_p13 = por %p3120_p12, %p3119_p11 }
  0x1f   :  { %p3122_p0 = pnand %p3121_p13, %p3115_p10 }
  0x21   :  { %3125 = shalt.err (!%p3122_p0)
}
  0x22   :  { %35 = dma.hbm_to_vmem [thread:$0]  %s3783_s1, 512, %s30_s16, [#allocation3], %s3197_s18, %s3197_s18, %s3198_s19  }
  0x23   :  { %s3199_s24 = smov [#allocation7]   ;;  %s3200_s26 = smov [#allocation10]  }
  0x24   :  { %s63_s25 = sshll.u32 %s3199_s24, 4  ;;  %s89_s11 = sshll.u32 %s3200_s26, 4  ;;  %s64_s25 = int_to_ptr.vmem [resolvable:$true] %s63_s25  ;;  %s90_s11 = int_to_ptr.vmem [resolvable:$true] %s89_s11 }
  0x25   :  { %s3134_s27 = scalar_lea.vmem %s64_s25, 6144  ;;  %p3139_p2 = scmp.lt.s32.totalorder %s64_s25, %s64_s25 }
  0x26   :  { %p3135_p1 = scmp.ne.s32.totalorder %s64_s25, %s3134_s27  ;;  %p3140_p3 = scmp.lt.s32.totalorder %s3134_s27, %s3134_s27 }
  0x28   :  { %p3141_p4 = por %p3140_p3, %p3139_p2 }
  0x2a   :  { %p3142_p5 = pnand %p3141_p4, %p3135_p1 }
  0x2c   :  { %3145 = shalt.err (!%p3142_p5)
}
  0x2d   :  { %69 = dma.hbm_to_vmem [thread:$0]  %s3791_s9, 6144, %s64_s25, [#allocation6], %s3197_s18, %s3197_s18, %s3198_s19  }
  0x2e   :  { %s3154_s1 = scalar_lea.vmem %s90_s11, 512  ;;  %p3159_p7 = scmp.lt.s32.totalorder %s90_s11, %s90_s11 }
  0x2f   :  { %p3155_p6 = scmp.ne.s32.totalorder %s90_s11, %s3154_s1  ;;  %p3160_p8 = scmp.lt.s32.totalorder %s3154_s1, %s3154_s1 }
  0x31   :  { %p3161_p9 = por %p3160_p8, %p3159_p7 }
  0x33   :  { %p3162_p10 = pnand %p3161_p9, %p3155_p6 }
  0x35   :  { %3165 = shalt.err (!%p3162_p10)
}
  0x36   :  { %95 = dma.hbm_to_vmem [thread:$0]  %s3794_s12, 512, %s90_s11, [#allocation9], %s3197_s18, %s3197_s18, %s3198_s19  }
  0x37   :  { %3186 = dma.done.wait [#allocation3], 512  }
  0x38   :  { %3187 = vsyncadd [#allocation3], 4294966784 }
  0x39   :  { %3188 = dma.done.wait [#allocation6], 6208  }
  0x3a   :  { %3189 = vsyncadd [#allocation6], 4294961088 }
  0x3b   :  { %3190 = dma.done.wait [#allocation9], 1024  }
  0x3c   :  { %3191 = vsyncadd [#allocation9], 4294966272  ;;  %v3201_v0 = vmov 0.0   ;;  %vm3202_vm0 = vmmov 0   ;;  %v134_v1 = vld [vmem:[%s3785_s3 + $0x38] sm:$0xff]  ;;  %v133_v2 = vld [vmem:[%s3785_s3 + $0x30] sm:$0xff]  ;;  %v425_v63 = vlaneseq }
  0x3d   :  { %2619 = vmatprep.subr.mxu0 %v3201_v0  ;;  %2638 = vmatprep.subr.mxu1 %v3201_v0  ;;  %vm136_vm1 = vcmask 523264   ;;  %v132_v3 = vld [vmem:[%s3785_s3 + $0x28] sm:$0xff]  ;;  %v3324_v4 = vld [vmem:[%s3782_s0] sm:$0xff]  ;;  %v3334_v6 = vld [vmem:[%s3782_s0 + $0x10] sm:$0xff]  ;;  %vm323_vm2 = vcmask 261120   ;;  %vm474_vm3 = vcmask 1043456  }
  0x3e   :  { %2635 = vmatprep.mubr.msk.f32.mxu0 %vm3202_vm0, %v3201_v0  ;;  %2654 = vmatprep.mubr.msk.f32.mxu1 %vm3202_vm0, %v3201_v0  ;;  %v3329_v5 = vld [vmem:[%s3782_s0 + $0x8] sm:$0xff]  ;;  %v3339_v7 = vld [vmem:[%s3782_s0 + $0x18] sm:$0xff]  ;;  %v137_v8 = vsel %vm136_vm1, %v3324_v4, 0.0  ;;  %v224_v9 = vmul.f32 %v3324_v4, %v3324_v4  ;;  %v131_v10 = vld [vmem:[%s3785_s3 + $0x20] sm:$0xff]  ;;  %v140_v12 = vsel %vm136_vm1, %v3334_v6, 0.0  ;;  %v226_v15 = vmul.f32 %v3334_v6, %v3334_v6  ;;  %s3204_s14 = smov 124  }
  0x3f   :  { %2620 = vmatpush3.msra.mxu0 %v134_v1  ;;  %2639 = vmatpush3.msra.mxu1 %v134_v1  ;;  %v138_v11 = vsel %vm136_vm1, %v3329_v5, 0.0  ;;  %v225_v13 = vmul.f32 %v3329_v5, %v3329_v5  ;;  %v227_v16 = vmul.f32 %v3339_v7, %v3339_v7  ;;  %v130_v18 = vld [vmem:[%s3785_s3 + $0x18] sm:$0xff]  ;;  %v142_v19 = vsel %vm136_vm1, %v3339_v7, 0.0  ;;  %v129_v24 = vld [vmem:[%s3785_s3 + $0x10] sm:$0xff]  ;;  %v128_v28 = vld [vmem:[%s3785_s3 + $0x8] sm:$0xff] }
  0x40   :  { %2621 = vmatprep.subr.mxu0 %v3201_v0  ;;  %2640 = vmatprep.subr.mxu1 %v3201_v0  ;;  %v139_v14 = vadd.f32 %v138_v11, %v137_v8  ;;  %v228_v17 = vsel %vm136_vm1, %v224_v9, 0.0  ;;  %v231_v23 = vsel %vm136_vm1, %v226_v15, 0.0  ;;  %v127_v31 = vld [vmem:[%s3785_s3] sm:$0xff]  ;;  %v322_v34 = vld [vmem:[%s3784_s2 + $0x18] sm:$0xff]  ;;  %v321_v44 = vld [vmem:[%s3784_s2 + $0x10] sm:$0xff]  ;;  %vm461_vm4 = vcmask 31744  }
  0x41   :  { %2622 = vmatpush3.msra.mxu0 %v133_v2  ;;  %2641 = vmatpush3.msra.mxu1 %v133_v2  ;;  %v229_v20 = vsel %vm136_vm1, %v225_v13, 0.0  ;;  %v233_v25 = vsel %vm136_vm1, %v227_v16, 0.0  ;;  %v3391_v43 = vld [vmem:[#allocation2] sm:$0xff]  ;;  %v320_v46 = vld [vmem:[%s3784_s2 + $0x8] sm:$0xff]  ;;  %v3408_v49 = vld [vmem:[#allocation2 + $0x10] sm:$0xff]  ;;  %v426_v2 = vshrl.u32 %v425_v63, 7 }
  0x42   :  { %2623 = vmatprep.subr.mxu0 %v3201_v0  ;;  %2642 = vmatprep.subr.mxu1 %v3201_v0  ;;  %v141_v21 = vadd.f32 %v140_v12, %v139_v14  ;;  %v230_v22 = vadd.f32 %v229_v20, %v228_v17  ;;  %v319_v47 = vld [vmem:[%s3784_s2] sm:$0xff]  ;;  %v3406_v48 = vld [vmem:[#allocation2 + $0x8] sm:$0xff]  ;;  %v3414_v50 = vld [vmem:[#allocation2 + $0x18] sm:$0xff]  ;;  %s3203_s2 = smov 4   ;;  %vm1507_vm5 = vcmask 64512  }
  0x43   :  { %2624 = vmatpush3.msra.mxu0 %v132_v3  ;;  %2643 = vmatpush3.msra.mxu1 %v132_v3  ;;  %v135_v51 = vld [vmem:[#allocation5] sm:$0xf]  ;;  %v3421_v8 = vsub.s32 0, %v426_v2 }
  0x44   :  { %2625 = vmatprep.subr.mxu0 %v3201_v0  ;;  %2644 = vmatprep.subr.mxu1 %v3201_v0  ;;  %v143_v26 = vadd.f32 %v142_v19, %v141_v21  ;;  %v232_v27 = vadd.f32 %v231_v23, %v230_v22 }
  0x45   :  { %2626 = vmatpush3.msra.mxu0 %v131_v10  ;;  %2645 = vmatpush3.msra.mxu1 %v131_v10 }
  0x46   :  { %2627 = vmatprep.subr.mxu0 %v3201_v0  ;;  %2646 = vmatprep.subr.mxu1 %v3201_v0  ;;  %v144_v29 = vrot.slane %v143_v26, 4  ;;  %v234_v30 = vadd.f32 %v233_v25, %v232_v27  ;;  %v694_v25 = vld [vmem:[%s3787_s5 + $0x70] sm:$0xff]  ;;  %v693_v27 = vld [vmem:[%s3787_s5 + $0x68] sm:$0xff] }
  0x47   :  { %2628 = vmatpush3.msra.mxu0 %v130_v18  ;;  %2647 = vmatpush3.msra.mxu1 %v130_v18 }
  0x48   :  { %2629 = vmatprep.subr.mxu0 %v3201_v0  ;;  %2648 = vmatprep.subr.mxu1 %v3201_v0  ;;  %v145_v32 = vadd.f32 %v144_v29, %v143_v26  ;;  %v235_v33 = vrot.slane %v234_v30, 4 }
  0x49   :  { %2630 = vmatpush3.msra.mxu0 %v129_v24  ;;  %2649 = vmatpush3.msra.mxu1 %v129_v24  ;;  %v695_v24 = vld [vmem:[%s3787_s5 + $0x78] sm:$0xff] }
  0x4a   :  { %2631 = vmatprep.subr.mxu0 %v3201_v0  ;;  %2650 = vmatprep.subr.mxu1 %v3201_v0  ;;  %v146_v35 = vrot.slane %v145_v32, 2  ;;  %v236_v36 = vadd.f32 %v235_v33, %v234_v30  ;;  %v692_v30 = vld [vmem:[%s3787_s5 + $0x60] sm:$0xff] }
  0x4b   :  { %2632 = vmatpush3.msra.mxu0 %v128_v28  ;;  %2651 = vmatpush3.msra.mxu1 %v128_v28 }
  0x4c   :  { %2633 = vmatprep.subr.mxu0 %v3201_v0  ;;  %2652 = vmatprep.subr.mxu1 %v3201_v0  ;;  %v147_v37 = vadd.f32 %v146_v35, %v145_v32  ;;  %v237_v38 = vrot.slane %v236_v36, 2 }
  0x4d   :  { %2634 = vmatpush3.msra.mxu0 %v127_v31  ;;  %2653 = vmatpush3.msra.mxu1 %v127_v31 }
  0x4e   :  { %2657 = vmatprep.subr.mxu0 %v322_v34  ;;  %v148_v39 = vrot.slane %v147_v37, 1  ;;  %v238_v40 = vadd.f32 %v237_v38, %v236_v36  ;;  %2671 = vmatprep.subr.msk.mxu1 %vm474_vm3, %v135_v51 }
  0x50   :  { %v149_v41 = vadd.f32 %v148_v39, %v147_v37  ;;  %v239_v42 = vrot.slane %v238_v40, 1 }
  0x52   :  { %2636 = vmatmul.mubr.msk.f32.vlgmr.msra.gmra.mxu0 %vm136_vm1, %v149_v41  ;;  %v240_v45 = vadd.f32 %v239_v42, %v238_v40  ;;  %v691_v40 = vld [vmem:[%s3787_s5 + $0x58] sm:$0xff]  ;;  %v690_v41 = vld [vmem:[%s3787_s5 + $0x50] sm:$0xff]  ;;  %v689_v42 = vld [vmem:[%s3787_s5 + $0x48] sm:$0xff] }
  0x53   :  { %2658 = vmatpush3.msra.mxu0 %v322_v34  ;;  %2665 = vmatprep.mubr.msk.f32.mxu0 %vm323_vm2, %v3391_v43 }
  0x54   :  { %2655 = vmatmul.mubr.msk.f32.vlgmr.msra.gmra.mxu1 %vm136_vm1, %v240_v45  ;;  %2659 = vmatprep.subr.mxu0 %v321_v44  ;;  %v3458_v45 = vld [vmem:[#allocation8] sm:$0xff] }
  0x55   :  { %2660 = vmatpush3.msra.mxu0 %v321_v44  ;;  %2672 = vmatpush3.msk.msra.mxu1 %vm474_vm3, %v135_v51  ;;  %v688_v44 = vld [vmem:[%s3787_s5 + $0x40] sm:$0xff] }
  0x56   :  { %2661 = vmatprep.subr.mxu0 %v320_v46  ;;  %2679 = vmatprep.subr.msk.mxu1 %vm474_vm3, %v135_v51 }
  0x57   :  { %2662 = vmatpush3.msra.mxu0 %v320_v46 }
  0x58   :  { %2663 = vmatprep.subr.mxu0 %v319_v47 }
  0x59   :  { %2664 = vmatpush3.msra.mxu0 %v319_v47 }
  0x5a   :  { %2666 = vmatmul.mubr.msk.f32.vlgmr.msra.gmra.mxu0 %vm323_vm2, %v3406_v48  ;;  %2715 = vmatprep.subr.mxu0 %v695_v24 }
  0x5b   :  { %2668 = vmatprep.mubr.msk.f32.mxu0 %vm323_vm2, %v3408_v49  ;;  %2716 = vmatpush3.msra.mxu0 %v695_v24  ;;  %v680_v24 = vld [vmem:[%s3787_s5] sm:$0xff] }
  0x5c   :  { %2717 = vmatprep.subr.mxu0 %v694_v25 }
  0x5d   :  { %2718 = vmatpush3.msra.mxu0 %v694_v25  ;;  %v700_v25 = vld [vmem:[%s3787_s5 + $0xa0] sm:$0xff] }
  0x5e   :  { %2669 = vmatmul.mubr.msk.f32.gmra.mxu0 %vm323_vm2, %v3414_v50  ;;  %2719 = vmatprep.subr.mxu0 %v693_v27 }
  0x5f   :  { %2720 = vmatpush3.msra.mxu0 %v693_v27  ;;  %v698_v27 = vld [vmem:[%s3787_s5 + $0x90] sm:$0xff] }
  0x60   :  { %2721 = vmatprep.subr.mxu0 %v692_v30 }
  0x61   :  { %2722 = vmatpush3.msra.mxu0 %v692_v30 }
  0x62   :  { %2723 = vmatprep.subr.mxu0 %v691_v40 }
  0x63   :  { %2724 = vmatpush3.msra.mxu0 %v691_v40  ;;  %v1206_v40 = vld [vmem:[%s3789_s7 + $0x68] sm:$0xff] }
  0x64   :  { %2725 = vmatprep.subr.mxu0 %v690_v41 }
  0x65   :  { %2726 = vmatpush3.msra.mxu0 %v690_v41  ;;  %v1205_v41 = vld [vmem:[%s3789_s7 + $0x60] sm:$0xff] }
  0x66   :  { %2727 = vmatprep.subr.mxu0 %v689_v42 }
  0x67   :  { %2728 = vmatpush3.msra.mxu0 %v689_v42  ;;  %v1204_v42 = vld [vmem:[%s3789_s7 + $0x58] sm:$0xff] }
  0x68   :  { %2729 = vmatprep.subr.mxu0 %v688_v44 }
  0x69   :  { %2730 = vmatpush3.msra.mxu0 %v688_v44  ;;  %v1203_v44 = vld [vmem:[%s3789_s7 + $0x50] sm:$0xff] }
 0x112   :  { %v219_v52 = vpop.f32.mrf.mxu0 }
 0x113   :  { %v223_v53 = vmul.f32 0.001953125, %v219_v52 }
 0x114   :  { %v2637_v54 = vpop.f32.mrf.mxu0  ;;  %v310_v55 = vpop.f32.mrf.mxu1 }
 0x115   :  { %v315_v56 = vmul.f32 %v223_v53, %v223_v53  ;;  %v314_v57 = vmul.f32 0.001953125, %v310_v55  ;;  %v436_v15 = vrot.slane %v223_v53, %v3421_v8 }
 0x116   :  { %v2656_v58 = vpop.f32.mrf.mxu1 }
 0x117   :  { %v316_v59 = vsub.f32 %v314_v57, %v315_v56 }
 0x119   :  { %v317_v60 = vadd.f32 1e-05, %v316_v59 }
 0x11a   :  { %v2667_v61 = vpop.f32.mrf.mxu0 }
 0x11b   :  { %3058 = vrsqrt.f32 %v317_v60  ;;  %v422_v11 = vadd.f32 1.0, %v2667_v61 }
 0x11c   :  { %v402_v62 = vpop.f32.mrf.mxu0 }
 0x11d   :  { %v421_v13 = vadd.f32 1.0, %v402_v62 }
 0x11e   :  { %v2670_v1 = vpop.f32.mrf.mxu0 }
 0x11f   :  { %v424_v14 = vadd.f32 1.0, %v2670_v1 }
 0x120   :  { %v412_v3 = vpop.f32.mrf.mxu0 }
 0x121   :  { %v423_v9 = vadd.f32 1.0, %v412_v3 }
 0x128   :  { %v3059_v10 = vpop.eup %3058 }
 0x129   :  { %v428_v12 = vrot.slane %v3059_v10, %v3421_v8  ;;  %v3480_v10 = vld [vmem:[#allocation10] sm:$0xff] }
 0x12b   :  { %v430_v16 = vmul.f32 %v428_v12, %v422_v11  ;;  %v429_v17 = vmul.f32 %v428_v12, %v421_v13  ;;  %v431_v18 = vmul.f32 %v428_v12, %v423_v9  ;;  %v432_v21 = vmul.f32 %v428_v12, %v424_v14  ;;  %v3486_v11 = vld [vmem:[#allocation10 + $0x8] sm:$0xff]  ;;  %v687_v12 = vld [vmem:[%s3787_s5 + $0x38] sm:$0xff] }
 0x12c   :  { %v3491_v13 = vld [vmem:[#allocation10 + $0x10] sm:$0xff] }
 0x12d   :  { %2673 = vmatprep.mubr.msk.f32.mxu1 %vm461_vm4, %v429_v17  ;;  %v437_v19 = vmul.f32 %v436_v15, %v429_v17  ;;  %v439_v20 = vmul.f32 %v436_v15, %v431_v18  ;;  %v438_v22 = vmul.f32 %v436_v15, %v430_v16  ;;  %v440_v23 = vmul.f32 %v436_v15, %v432_v21  ;;  %v686_v14 = vld [vmem:[%s3787_s5 + $0x30] sm:$0xff]  ;;  %v3500_v15 = vld [vmem:[#allocation10 + $0x18] sm:$0xff] }
 0x12e   :  { %2674 = vmatmul.mubr.msk.f32.vlgmr.msra.gmra.mxu1 %vm461_vm4, %v430_v16  ;;  %v685_v16 = vld [vmem:[%s3787_s5 + $0x28] sm:$0xff]  ;;  %v684_v17 = vld [vmem:[%s3787_s5 + $0x20] sm:$0xff] }
 0x12f   :  { %445 = vrot.lane.b32.xlu0 %v437_v19, %s3203_s2  ;;  %2676 = vmatprep.mubr.msk.f32.mxu1 %vm461_vm4, %v431_v18  ;;  %v683_v18 = vld [vmem:[%s3787_s5 + $0x18] sm:$0xff] }
 0x130   :  { %449 = vrot.lane.b32.xlu1 %v439_v20, %s3203_s2  ;;  %2680 = vmatpush3.msk.msra.mxu1 %vm474_vm3, %v135_v51  ;;  %v703_v19 = vld [vmem:[%s3787_s5 + $0xb8] sm:$0xff]  ;;  %v682_v20 = vld [vmem:[%s3787_s5 + $0x10] sm:$0xff] }
 0x131   :  { %2759 = vmatprep.subr.mxu0 %v703_v19 }
 0x132   :  { %2677 = vmatmul.mubr.msk.f32.gmra.mxu1 %vm461_vm4, %v432_v21  ;;  %v702_v21 = vld [vmem:[%s3787_s5 + $0xb0] sm:$0xff] }
 0x133   :  { %447 = vrot.lane.b32.xlu0 %v438_v22, %s3203_s2  ;;  %v681_v22 = vld [vmem:[%s3787_s5 + $0x8] sm:$0xff] }
 0x134   :  { %451 = vrot.lane.b32.xlu1 %v440_v23, %s3203_s2  ;;  %v701_v23 = vld [vmem:[%s3787_s5 + $0xa8] sm:$0xff] }
 0x1a1   :  { %v446_v26 = vpop.permute.xlu0 %445 }
 0x1a2   :  { %v457_v28 = vsub.f32 %v402_v62, %v446_v26  ;;  %v450_v29 = vpop.permute.xlu1 %449  ;;  %v699_v26 = vld [vmem:[%s3787_s5 + $0x98] sm:$0xff] }
 0x1a3   :  { %v459_v32 = vsub.f32 %v412_v3, %v450_v29  ;;  %v696_v29 = vld [vmem:[%s3787_s5 + $0x80] sm:$0xff] }
 0x1a4   :  { %567 = vrot.lane.b32.xlu0 %v457_v28, %s3204_s14  ;;  %v697_v28 = vld [vmem:[%s3787_s5 + $0x88] sm:$0xff] }
 0x1a5   :  { %v448_v31 = vpop.permute.xlu0 %447 }
 0x1a6   :  { %v458_v33 = vsub.f32 %v2667_v61, %v448_v31  ;;  %v452_v34 = vpop.permute.xlu1 %451 }
 0x1a7   :  { %v460_v35 = vsub.f32 %v2670_v1, %v452_v34 }
 0x1a8   :  { %569 = vrot.lane.b32.xlu1 %v458_v33, %s3204_s14  ;;  %571 = vrot.lane.b32.xlu0 %v459_v32, %s3204_s14 }
 0x1ac   :  { %573 = vrot.lane.b32.xlu1 %v460_v35, %s3204_s14 }
 0x1ee   :  { %v2675_v46 = vpop.f32.mrf.mxu1 }
 0x1ef   :  { %v669_v53 = vmul.f32 %v2675_v46, %v3329_v5  ;;  %v1202_v46 = vld [vmem:[%s3789_s7 + $0x48] sm:$0xff] }
 0x1f0   :  { %v544_v47 = vpop.f32.mrf.mxu1 }
 0x1f1   :  { %v668_v55 = vmul.f32 %v544_v47, %v3324_v4  ;;  %v3470_v4 = vld [vmem:[#allocation8 + $0x8] sm:$0xff]  ;;  %v1201_v47 = vld [vmem:[%s3789_s7 + $0x40] sm:$0xff] }
 0x1f2   :  { %v2678_v51 = vpop.f32.mrf.mxu1 }
 0x1f3   :  { %v671_v58 = vmul.f32 %v2678_v51, %v3339_v7  ;;  %v3478_v7 = vld [vmem:[#allocation8 + $0x18] sm:$0xff] }
 0x1f4   :  { %v554_v52 = vpop.f32.mrf.mxu1  ;;  %v1200_v51 = vld [vmem:[%s3789_s7 + $0x38] sm:$0xff] }
 0x1f5   :  { %v670_v61 = vmul.f32 %v554_v52, %v3334_v6  ;;  %v3472_v6 = vld [vmem:[#allocation8 + $0x10] sm:$0xff] }
 0x1f6   :  { %v1199_v52 = vld [vmem:[%s3789_s7 + $0x30] sm:$0xff] }
 0x216   :  { %v568_v36 = vpop.permute.xlu0 %567 }
 0x217   :  { %2681 = vmatprep.mubr.msk.f32.mxu1 %vm461_vm4, %v568_v36 }
 0x21a   :  { %v572_v37 = vpop.permute.xlu0 %571  ;;  %v570_v38 = vpop.permute.xlu1 %569 }
 0x21b   :  { %2682 = vmatmul.mubr.msk.f32.vlgmr.msra.gmra.mxu1 %vm461_vm4, %v570_v38  ;;  %v1208_v38 = vld [vmem:[%s3789_s7 + $0x78] sm:$0xff] }
 0x21c   :  { %2684 = vmatprep.mubr.msk.f32.mxu1 %vm461_vm4, %v572_v37 }
 0x21e   :  { %v574_v39 = vpop.permute.xlu1 %573 }
 0x21f   :  { %2685 = vmatmul.mubr.msk.f32.gmra.mxu1 %vm461_vm4, %v574_v39  ;;  %v1207_v39 = vld [vmem:[%s3789_s7 + $0x70] sm:$0xff] }
 0x220   :  { %2695 = vmatprep.mubr.msk.f32.mxu1 %vm323_vm2, %v3458_v45 }
 0x2db   :  { %v2683_v54 = vpop.f32.mrf.mxu1 }
 0x2dc   :  { %v673_v56 = vadd.f32 %v2683_v54, %v669_v53  ;;  %v1198_v53 = vld [vmem:[%s3789_s7 + $0x28] sm:$0xff]  ;;  %v1197_v54 = vld [vmem:[%s3789_s7 + $0x20] sm:$0xff] }
 0x2dd   :  { %v649_v57 = vpop.f32.mrf.mxu1 }
 0x2de   :  { %v672_v59 = vadd.f32 %v668_v55, %v649_v57  ;;  %v677_v1 = vmax.f32 %v673_v56, 0.0  ;;  %v1196_v55 = vld [vmem:[%s3789_s7 + $0x18] sm:$0xff]  ;;  %v1195_v56 = vld [vmem:[%s3789_s7 + $0x10] sm:$0xff]  ;;  %v1194_v57 = vld [vmem:[%s3789_s7 + $0x8] sm:$0xff] }
 0x2df   :  { %v2686_v60 = vpop.f32.mrf.mxu1 }
 0x2e0   :  { %v676_v62 = vmax.f32 %v672_v59, 0.0  ;;  %v675_v63 = vadd.f32 %v2686_v60, %v671_v58  ;;  %v1193_v58 = vld [vmem:[%s3789_s7] sm:$0xff]  ;;  %v1381_v59 = vld [vmem:[%s3788_s6 + $0x18] sm:$0xff] }
 0x2e1   :  { %v659_v2 = vpop.f32.mrf.mxu1 }
 0x2e2   :  { %v679_v3 = vmax.f32 %v675_v63, 0.0  ;;  %v674_v9 = vadd.f32 %v670_v61, %v659_v2  ;;  %2731 = vmatprep.mubr.msk.f32.mxu0 %vm136_vm1, %v676_v62 }
 0x2e3   :  { %2732 = vmatmul.mubr.msk.f32.vlgmr.msra.gmra.mxu0 %vm136_vm1, %v677_v1 }
 0x2e4   :  { %v678_v5 = vmax.f32 %v674_v9, 0.0  ;;  %2687 = vmatprep.subr.mxu1 %v679_v3  ;;  %2760 = vmatpush3.msra.mxu0 %v703_v19 }
 0x2e5   :  { %2688 = vmatpush3.msra.mxu1 %v679_v3  ;;  %2761 = vmatprep.subr.mxu0 %v702_v21 }
 0x2e6   :  { %2689 = vmatprep.subr.mxu1 %v678_v5  ;;  %2734 = vmatprep.mubr.msk.f32.mxu0 %vm136_vm1, %v678_v5 }
 0x2e7   :  { %2690 = vmatpush3.msra.mxu1 %v678_v5  ;;  %2735 = vmatmul.mubr.msk.f32.gmra.mxu0 %vm136_vm1, %v679_v3 }
 0x2e8   :  { %2691 = vmatprep.subr.mxu1 %v677_v1  ;;  %2762 = vmatpush3.msra.mxu0 %v702_v21 }
 0x2e9   :  { %2692 = vmatpush3.msra.mxu1 %v677_v1  ;;  %2763 = vmatprep.subr.mxu0 %v701_v23 }
 0x2ea   :  { %2693 = vmatprep.subr.mxu1 %v676_v62  ;;  %2764 = vmatpush3.msra.mxu0 %v701_v23 }
 0x2eb   :  { %2694 = vmatpush3.msra.mxu1 %v676_v62  ;;  %2765 = vmatprep.subr.mxu0 %v700_v25 }
 0x2ec   :  { %2696 = vmatmul.mubr.msk.f32.vlgmr.msra.gmra.mxu1 %vm323_vm2, %v3470_v4  ;;  %2701 = vmatprep.subr.mxu1 %v679_v3 }
 0x2ed   :  { %2702 = vmatpush3.msra.mxu1 %v679_v3  ;;  %2698 = vmatprep.mubr.msk.f32.mxu1 %vm323_vm2, %v3472_v6 }
 0x2ee   :  { %2703 = vmatprep.subr.mxu1 %v678_v5  ;;  %2766 = vmatpush3.msra.mxu0 %v700_v25 }
 0x2ef   :  { %2704 = vmatpush3.msra.mxu1 %v678_v5  ;;  %2767 = vmatprep.subr.mxu0 %v699_v26 }
 0x2f0   :  { %2699 = vmatmul.mubr.msk.f32.gmra.mxu1 %vm323_vm2, %v3478_v7  ;;  %2705 = vmatprep.subr.mxu1 %v677_v1 }
 0x2f1   :  { %2706 = vmatpush3.msra.mxu1 %v677_v1  ;;  %2709 = vmatprep.mubr.msk.f32.mxu1 %vm323_vm2, %v3480_v10 }
 0x2f2   :  { %2707 = vmatprep.subr.mxu1 %v676_v62  ;;  %2768 = vmatpush3.msra.mxu0 %v699_v26 }
 0x2f3   :  { %2708 = vmatpush3.msra.mxu1 %v676_v62  ;;  %2769 = vmatprep.subr.mxu0 %v698_v27 }
 0x2f4   :  { %2710 = vmatmul.mubr.msk.f32.vlgmr.msra.gmra.mxu1 %vm323_vm2, %v3486_v11  ;;  %2737 = vmatprep.subr.mxu1 %v687_v12 }
 0x2f5   :  { %2712 = vmatprep.mubr.msk.f32.mxu1 %vm323_vm2, %v3491_v13  ;;  %2738 = vmatpush3.msra.mxu1 %v687_v12 }
 0x2f6   :  { %2739 = vmatprep.subr.mxu1 %v686_v14  ;;  %2770 = vmatpush3.msra.mxu0 %v698_v27 }
 0x2f7   :  { %2740 = vmatpush3.msra.mxu1 %v686_v14  ;;  %2771 = vmatprep.subr.mxu0 %v697_v28 }
 0x2f8   :  { %2713 = vmatmul.mubr.msk.f32.gmra.mxu1 %vm323_vm2, %v3500_v15  ;;  %2741 = vmatprep.subr.mxu1 %v685_v16 }
 0x2f9   :  { %2742 = vmatpush3.msra.mxu1 %v685_v16  ;;  %2772 = vmatpush3.msra.mxu0 %v697_v28 }
 0x2fa   :  { %2743 = vmatprep.subr.mxu1 %v684_v17  ;;  %2773 = vmatprep.subr.mxu0 %v696_v29 }
 0x2fb   :  { %2744 = vmatpush3.msra.mxu1 %v684_v17  ;;  %2774 = vmatpush3.msra.mxu0 %v696_v29 }
 0x2fc   :  { %2745 = vmatprep.subr.mxu1 %v683_v18  ;;  %2816 = vmatprep.subr.mxu0 %v3201_v0 }
 0x2fd   :  { %2746 = vmatpush3.msra.mxu1 %v683_v18 }
 0x2fe   :  { %2747 = vmatprep.subr.mxu1 %v682_v20 }
 0x2ff   :  { %2748 = vmatpush3.msra.mxu1 %v682_v20 }
 0x300   :  { %2749 = vmatprep.subr.mxu1 %v681_v22 }
 0x301   :  { %2750 = vmatpush3.msra.mxu1 %v681_v22 }
 0x302   :  { %2751 = vmatprep.subr.mxu1 %v680_v24 }
 0x303   :  { %2752 = vmatpush3.msra.mxu1 %v680_v24 }
 0x304   :  { %2781 = vmatprep.subr.mxu1 %v3201_v0 }
 0x3a3   :  { %v2733_v60 = vpop.f32.mrf.mxu0 }
 0x3a5   :  { %v976_v61 = vpop.f32.mrf.mxu0 }
 0x3a7   :  { %v2736_v63 = vpop.f32.mrf.mxu0 }
 0x3a9   :  { %v986_v2 = vpop.f32.mrf.mxu0 }
 0x3ac   :  { %v2697_v30 = vpop.f32.mrf.mxu1 }
 0x3ae   :  { %v782_v31 = vpop.f32.mrf.mxu1 }
 0x3af   :  { %2753 = vmatprep.mubr.msk.f32.mxu1 %vm136_vm1, %v782_v31 }
 0x3b0   :  { %v2700_v32 = vpop.f32.mrf.mxu1  ;;  %2754 = vmatmul.mubr.msk.f32.vlgmr.msra.gmra.mxu1 %vm136_vm1, %v2697_v30 }
 0x3b1   :  { %2782 = vmatpush3.msra.mxu1 %v1208_v38 }
 0x3b2   :  { %v792_v33 = vpop.f32.mrf.mxu1  ;;  %2783 = vmatprep.subr.mxu1 %v3201_v0 }
 0x3b3   :  { %2756 = vmatprep.mubr.msk.f32.mxu1 %vm136_vm1, %v792_v33  ;;  %2784 = vmatpush3.msra.mxu1 %v1207_v39 }
 0x3b4   :  { %v2711_v34 = vpop.f32.mrf.mxu1  ;;  %2757 = vmatmul.mubr.msk.f32.gmra.mxu1 %vm136_vm1, %v2700_v32  ;;  %2785 = vmatprep.subr.mxu1 %v3201_v0 }
 0x3b5   :  { %2813 = vmatprep.mubr.msk.f32.mxu1 %vm3202_vm0, %v3201_v0  ;;  %2786 = vmatpush3.msra.mxu1 %v1206_v40 }
 0x3b6   :  { %v879_v35 = vpop.f32.mrf.mxu1  ;;  %2787 = vmatprep.subr.mxu1 %v3201_v0 }
 0x3b7   :  { %2775 = vmatprep.mubr.msk.f32.mxu0 %vm136_vm1, %v879_v35  ;;  %2788 = vmatpush3.msra.mxu1 %v1205_v41 }
 0x3b8   :  { %v2714_v36 = vpop.f32.mrf.mxu1  ;;  %2776 = vmatmul.mubr.msk.f32.vlgmr.msra.gmra.mxu0 %vm136_vm1, %v2711_v34  ;;  %2789 = vmatprep.subr.mxu1 %v3201_v0 }
 0x3b9   :  { %2817 = vmatpush3.msra.mxu0 %v1208_v38  ;;  %2790 = vmatpush3.msra.mxu1 %v1204_v42 }
 0x3ba   :  { %v889_v37 = vpop.f32.mrf.mxu1  ;;  %2818 = vmatprep.subr.mxu0 %v3201_v0  ;;  %2791 = vmatprep.subr.mxu1 %v3201_v0 }
 0x3bb   :  { %2778 = vmatprep.mubr.msk.f32.mxu0 %vm136_vm1, %v889_v37  ;;  %2819 = vmatpush3.msra.mxu0 %v1207_v39 }
 0x3bc   :  { %2779 = vmatmul.mubr.msk.f32.gmra.mxu0 %vm136_vm1, %v2714_v36  ;;  %2820 = vmatprep.subr.mxu0 %v3201_v0 }
 0x3bd   :  { %2848 = vmatprep.mubr.msk.f32.mxu0 %vm3202_vm0, %v3201_v0  ;;  %2821 = vmatpush3.msra.mxu0 %v1206_v40 }
 0x3be   :  { %2822 = vmatprep.subr.mxu0 %v3201_v0  ;;  %2792 = vmatpush3.msra.mxu1 %v1203_v44 }
 0x3bf   :  { %2823 = vmatpush3.msra.mxu0 %v1205_v41  ;;  %2793 = vmatprep.subr.mxu1 %v3201_v0 }
 0x3c0   :  { %2824 = vmatprep.subr.mxu0 %v3201_v0  ;;  %2794 = vmatpush3.msra.mxu1 %v1202_v46 }
 0x3c1   :  { %2825 = vmatpush3.msra.mxu0 %v1204_v42  ;;  %2795 = vmatprep.subr.mxu1 %v3201_v0 }
 0x3c2   :  { %2826 = vmatprep.subr.mxu0 %v3201_v0  ;;  %2796 = vmatpush3.msra.mxu1 %v1201_v47 }
 0x3c3   :  { %2827 = vmatpush3.msra.mxu0 %v1203_v44  ;;  %2797 = vmatprep.subr.mxu1 %v3201_v0 }
 0x3c4   :  { %2828 = vmatprep.subr.mxu0 %v3201_v0  ;;  %2798 = vmatpush3.msra.mxu1 %v1200_v51 }
 0x3c5   :  { %2829 = vmatpush3.msra.mxu0 %v1202_v46  ;;  %2799 = vmatprep.subr.mxu1 %v3201_v0 }
 0x3c6   :  { %2830 = vmatprep.subr.mxu0 %v3201_v0  ;;  %2800 = vmatpush3.msra.mxu1 %v1199_v52 }
 0x3c7   :  { %2831 = vmatpush3.msra.mxu0 %v1201_v47  ;;  %2801 = vmatprep.subr.mxu1 %v3201_v0  ;;  %v1380_v47 = vld [vmem:[%s3788_s6 + $0x10] sm:$0xff] }
 0x3c8   :  { %2832 = vmatprep.subr.mxu0 %v3201_v0  ;;  %2802 = vmatpush3.msra.mxu1 %v1198_v53 }
 0x3c9   :  { %2833 = vmatpush3.msra.mxu0 %v1200_v51  ;;  %2803 = vmatprep.subr.mxu1 %v3201_v0 }
 0x3ca   :  { %2834 = vmatprep.subr.mxu0 %v3201_v0  ;;  %2804 = vmatpush3.msra.mxu1 %v1197_v54 }
 0x3cb   :  { %2835 = vmatpush3.msra.mxu0 %v1199_v52  ;;  %2805 = vmatprep.subr.mxu1 %v3201_v0  ;;  %v1379_v52 = vld [vmem:[%s3788_s6 + $0x8] sm:$0xff] }
 0x3cc   :  { %2836 = vmatprep.subr.mxu0 %v3201_v0  ;;  %2806 = vmatpush3.msra.mxu1 %v1196_v55 }
 0x3cd   :  { %2837 = vmatpush3.msra.mxu0 %v1198_v53  ;;  %2807 = vmatprep.subr.mxu1 %v3201_v0  ;;  %v1378_v53 = vld [vmem:[%s3788_s6] sm:$0xff]  ;;  %s3205_s6 = smov 120  }
 0x3ce   :  { %2838 = vmatprep.subr.mxu0 %v3201_v0  ;;  %2808 = vmatpush3.msra.mxu1 %v1195_v56 }
 0x3cf   :  { %2839 = vmatpush3.msra.mxu0 %v1197_v54  ;;  %2809 = vmatprep.subr.mxu1 %v3201_v0 }
 0x3d0   :  { %2840 = vmatprep.subr.mxu0 %v3201_v0  ;;  %2810 = vmatpush3.msra.mxu1 %v1194_v57 }
 0x3d1   :  { %2841 = vmatpush3.msra.mxu0 %v1196_v55  ;;  %2811 = vmatprep.subr.mxu1 %v3201_v0 }
 0x3d2   :  { %2842 = vmatprep.subr.mxu0 %v3201_v0  ;;  %2812 = vmatpush3.msra.mxu1 %v1193_v58 }
 0x3d3   :  { %2843 = vmatpush3.msra.mxu0 %v1195_v56  ;;  %2851 = vmatprep.subr.mxu1 %v1381_v59 }
 0x3d4   :  { %2844 = vmatprep.subr.mxu0 %v3201_v0 }
 0x3d5   :  { %2845 = vmatpush3.msra.mxu0 %v1194_v57 }
 0x3d6   :  { %2846 = vmatprep.subr.mxu0 %v3201_v0 }
 0x3d7   :  { %2847 = vmatpush3.msra.mxu0 %v1193_v58 }
 0x470   :  { %v2755_v62 = vpop.f32.mrf.mxu1 }
 0x471   :  { %v1079_v5 = vadd.f32 %v2755_v62, %v2733_v60 }
 0x472   :  { %v1073_v1 = vpop.f32.mrf.mxu1 }
 0x473   :  { %v1074_v12 = vadd.f32 %v1073_v1, %v976_v61 }
 0x474   :  { %v2758_v3 = vpop.f32.mrf.mxu1 }
 0x475   :  { %v1089_v19 = vadd.f32 %v2758_v3, %v2736_v63 }
 0x476   :  { %v1083_v14 = vpop.f32.mrf.mxu1 }
 0x477   :  { %v1084_v20 = vadd.f32 %v1083_v14, %v986_v2 }
 0x478   :  { %v2777_v9 = vpop.f32.mrf.mxu0 }
 0x479   :  { %v3641_v0 = vadd.f32 %v2777_v9, %v1079_v5 }
 0x47a   :  { %v1170_v16 = vpop.f32.mrf.mxu0 }
 0x47b   :  { %v3643_v17 = vadd.f32 %v1170_v16, %v1074_v12  ;;  %v1291_v23 = vmul.f32 %v3641_v0, %v3641_v0 }
 0x47c   :  { %v2780_v18 = vpop.f32.mrf.mxu0 }
 0x47d   :  { %v1290_v21 = vmul.f32 %v3643_v17, %v3643_v17  ;;  %v1210_v24 = vadd.f32 %v3641_v0, %v3643_v17  ;;  %v3651_v25 = vadd.f32 %v2780_v18, %v1089_v19 }
 0x47e   :  { %v1180_v22 = vpop.f32.mrf.mxu0 }
 0x47f   :  { %v3653_v26 = vadd.f32 %v1180_v22, %v1084_v20  ;;  %v1294_v27 = vadd.f32 %v1291_v23, %v1290_v21  ;;  %v1293_v30 = vmul.f32 %v3651_v25, %v3651_v25 }
 0x481   :  { %v1211_v28 = vadd.f32 %v1210_v24, %v3653_v26  ;;  %v1292_v29 = vmul.f32 %v3653_v26, %v3653_v26 }
 0x483   :  { %v1212_v31 = vadd.f32 %v1211_v28, %v3651_v25  ;;  %v1295_v32 = vadd.f32 %v1294_v27, %v1292_v29 }
 0x485   :  { %v1213_v33 = vrot.slane %v1212_v31, 4  ;;  %v1296_v34 = vadd.f32 %v1295_v32, %v1293_v30 }
 0x487   :  { %v1214_v35 = vadd.f32 %v1213_v33, %v1212_v31  ;;  %v1297_v36 = vrot.slane %v1296_v34, 4 }
 0x489   :  { %v1215_v37 = vrot.slane %v1214_v35, 2  ;;  %v1298_v38 = vadd.f32 %v1297_v36, %v1296_v34 }
 0x48b   :  { %v1216_v39 = vadd.f32 %v1215_v37, %v1214_v35  ;;  %v1299_v40 = vrot.slane %v1298_v38, 2 }
 0x48d   :  { %v1217_v41 = vrot.slane %v1216_v39, 1  ;;  %v1300_v42 = vadd.f32 %v1299_v40, %v1298_v38 }
 0x48f   :  { %v1218_v44 = vadd.f32 %v1217_v41, %v1216_v39  ;;  %v1301_v46 = vrot.slane %v1300_v42, 1 }
 0x491   :  { %2814 = vmatmul.mubr.f32.vlgmr.msra.gmra.mxu1 %v1218_v44  ;;  %v1302_v51 = vadd.f32 %v1301_v46, %v1300_v42 }
 0x492   :  { %2852 = vmatpush3.msra.mxu1 %v1381_v59  ;;  %2859 = vmatprep.mubr.msk.f32.mxu1 %vm323_vm2, %v3391_v43  ;;  %v1209_v43 = vld [vmem:[%s3790_s8] sm:$0xff] }
 0x493   :  { %2849 = vmatmul.mubr.f32.vlgmr.msra.gmra.mxu0 %v1302_v51  ;;  %2853 = vmatprep.subr.mxu1 %v1380_v47 }
 0x494   :  { %2854 = vmatpush3.msra.mxu1 %v1380_v47  ;;  %2865 = vmatprep.subr.mxu0 %v1209_v43 }
 0x495   :  { %2855 = vmatprep.subr.mxu1 %v1379_v52  ;;  %2866 = vmatpush3.msra.mxu0 %v1209_v43 }
 0x496   :  { %2856 = vmatpush3.msra.mxu1 %v1379_v52 }
 0x497   :  { %2857 = vmatprep.subr.mxu1 %v1378_v53 }
 0x498   :  { %2858 = vmatpush3.msra.mxu1 %v1378_v53 }
 0x499   :  { %2860 = vmatmul.mubr.msk.f32.vlgmr.msra.gmra.mxu1 %vm323_vm2, %v3406_v48  ;;  %2873 = vmatprep.subr.mxu1 %v1209_v43 }
 0x49a   :  { %2862 = vmatprep.mubr.msk.f32.mxu1 %vm323_vm2, %v3408_v49  ;;  %2874 = vmatpush3.msra.mxu1 %v1209_v43 }
 0x49d   :  { %2863 = vmatmul.mubr.msk.f32.gmra.mxu1 %vm323_vm2, %v3414_v50 }
 0x551   :  { %v1285_v54 = vpop.f32.mrf.mxu1 }
 0x552   :  { %v1289_v55 = vmul.f32 0.001953125, %v1285_v54 }
 0x553   :  { %v2815_v56 = vpop.f32.mrf.mxu1  ;;  %v1369_v57 = vpop.f32.mrf.mxu0 }
 0x554   :  { %v1374_v58 = vmul.f32 %v1289_v55, %v1289_v55  ;;  %v1373_v48 = vmul.f32 0.001953125, %v1369_v57  ;;  %v1482_v14 = vrot.slane %v1289_v55, %v3421_v8 }
 0x555   :  { %v2850_v59 = vpop.f32.mrf.mxu0 }
 0x556   :  { %v1375_v60 = vsub.f32 %v1373_v48, %v1374_v58  ;;  %v1751_v58 = vld [vmem:[#allocation7 + $0xe8] sm:$0xff]  ;;  %v1750_v48 = vld [vmem:[#allocation7 + $0xe0] sm:$0xff]  ;;  %v1749_v59 = vld [vmem:[#allocation7 + $0xd8] sm:$0xff] }
 0x558   :  { %v1376_v49 = vadd.f32 1e-05, %v1375_v60  ;;  %v1747_v60 = vld [vmem:[#allocation7 + $0xc8] sm:$0xff] }
 0x559   :  { %v2861_v61 = vpop.f32.mrf.mxu1 }
 0x55a   :  { %3060 = vrsqrt.f32 %v1376_v49  ;;  %v1468_v2 = vadd.f32 1.0, %v2861_v61  ;;  %v1746_v49 = vld [vmem:[#allocation7 + $0xc0] sm:$0xff] }
 0x55b   :  { %v1448_v50 = vpop.f32.mrf.mxu1 }
 0x55c   :  { %v1467_v9 = vadd.f32 1.0, %v1448_v50 }
 0x55d   :  { %v2864_v62 = vpop.f32.mrf.mxu1 }
 0x55e   :  { %v1470_v5 = vadd.f32 1.0, %v2864_v62 }
 0x55f   :  { %v1458_v63 = vpop.f32.mrf.mxu1 }
 0x560   :  { %v1469_v12 = vadd.f32 1.0, %v1458_v63 }
 0x567   :  { %v3061_v1 = vpop.eup %3060 }
 0x568   :  { %v1474_v3 = vrot.slane %v3061_v1, %v3421_v8  ;;  %v1743_v1 = vld [vmem:[#allocation7 + $0xa8] sm:$0xff] }
 0x56a   :  { %v1476_v16 = vmul.f32 %v1474_v3, %v1468_v2  ;;  %v1475_v18 = vmul.f32 %v1474_v3, %v1467_v9  ;;  %v1478_v19 = vmul.f32 %v1474_v3, %v1470_v5  ;;  %v1477_v20 = vmul.f32 %v1474_v3, %v1469_v12  ;;  %v1730_v2 = vld [vmem:[#allocation7 + $0x40] sm:$0xff]  ;;  %v1729_v9 = vld [vmem:[#allocation7 + $0x38] sm:$0xff]  ;;  %v1728_v12 = vld [vmem:[#allocation7 + $0x30] sm:$0xff] }
 0x56b   :  { %v1742_v3 = vld [vmem:[#allocation7 + $0xa0] sm:$0xff]  ;;  %v1741_v5 = vld [vmem:[#allocation7 + $0x98] sm:$0xff] }
 0x56c   :  { %2867 = vmatprep.mubr.msk.f32.mxu0 %vm1507_vm5, %v1475_v18  ;;  %v1484_v21 = vmul.f32 %v1482_v14, %v1476_v16  ;;  %v1483_v22 = vmul.f32 %v1482_v14, %v1475_v18  ;;  %v1486_v23 = vmul.f32 %v1482_v14, %v1478_v19  ;;  %v1485_v24 = vmul.f32 %v1482_v14, %v1477_v20  ;;  %v1740_v14 = vld [vmem:[#allocation7 + $0x90] sm:$0xff]  ;;  %v1739_v18 = vld [vmem:[#allocation7 + $0x88] sm:$0xff] }
 0x56d   :  { %2868 = vmatmul.mubr.msk.f32.vlgmr.msra.gmra.mxu0 %vm1507_vm5, %v1476_v16  ;;  %v1727_v16 = vld [vmem:[#allocation7 + $0x28] sm:$0xff] }
 0x56e   :  { %1493 = vrot.lane.b32.xlu1 %v1484_v21, %s3198_s19  ;;  %1491 = vrot.lane.b32.xlu0 %v1483_v22, %s3198_s19  ;;  %v1725_v21 = vld [vmem:[#allocation7 + $0x18] sm:$0xff] }
 0x56f   :  { %2870 = vmatprep.mubr.msk.f32.mxu0 %vm1507_vm5, %v1477_v20  ;;  %v1738_v20 = vld [vmem:[#allocation7 + $0x80] sm:$0xff]  ;;  %v1769_v22 = vld [vmem:[#allocation7 + $0x178] sm:$0xff] }
 0x571   :  { %2871 = vmatmul.mubr.msk.f32.gmra.mxu0 %vm1507_vm5, %v1478_v19  ;;  %v1726_v19 = vld [vmem:[#allocation7 + $0x20] sm:$0xff] }
 0x572   :  { %1497 = vrot.lane.b32.xlu1 %v1486_v23, %s3198_s19  ;;  %1495 = vrot.lane.b32.xlu0 %v1485_v24, %s3198_s19  ;;  %v1768_v23 = vld [vmem:[#allocation7 + $0x170] sm:$0xff] }
 0x573   :  { %2889 = vmatprep.mubr.msk.f32.mxu0 %vm323_vm2, %v3458_v45  ;;  %v1724_v24 = vld [vmem:[#allocation7 + $0x10] sm:$0xff] }
 0x5e0   :  { %v1494_v8 = vpop.permute.xlu1 %1493  ;;  %v1492_v27 = vpop.permute.xlu0 %1491 }
 0x5e1   :  { %v1504_v28 = vsub.f32 %v2861_v61, %v1494_v8  ;;  %v1503_v29 = vsub.f32 %v1448_v50, %v1492_v27  ;;  %v1745_v61 = vld [vmem:[#allocation7 + $0xb8] sm:$0xff]  ;;  %v1732_v50 = vld [vmem:[#allocation7 + $0x50] sm:$0xff]  ;;  %v1767_v8 = vld [vmem:[#allocation7 + $0x168] sm:$0xff] }
 0x5e2   :  { %v1766_v27 = vld [vmem:[#allocation7 + $0x160] sm:$0xff] }
 0x5e3   :  { %1611 = vrot.lane.b32.xlu1 %v1504_v28, %s3205_s6  ;;  %1609 = vrot.lane.b32.xlu0 %v1503_v29, %s3205_s6  ;;  %v1723_v28 = vld [vmem:[#allocation7 + $0x8] sm:$0xff]  ;;  %v1765_v29 = vld [vmem:[#allocation7 + $0x158] sm:$0xff] }
 0x5e4   :  { %v1498_v30 = vpop.permute.xlu1 %1497  ;;  %v1496_v31 = vpop.permute.xlu0 %1495 }
 0x5e5   :  { %v1506_v32 = vsub.f32 %v2864_v62, %v1498_v30  ;;  %v1505_v33 = vsub.f32 %v1458_v63, %v1496_v31  ;;  %v1744_v62 = vld [vmem:[#allocation7 + $0xb0] sm:$0xff]  ;;  %v1731_v63 = vld [vmem:[#allocation7 + $0x48] sm:$0xff] }
 0x5e6   :  { %v1764_v30 = vld [vmem:[#allocation7 + $0x150] sm:$0xff]  ;;  %v1763_v31 = vld [vmem:[#allocation7 + $0x148] sm:$0xff] }
 0x5e7   :  { %1615 = vrot.lane.b32.xlu1 %v1506_v32, %s3205_s6  ;;  %1613 = vrot.lane.b32.xlu0 %v1505_v33, %s3205_s6  ;;  %v1762_v32 = vld [vmem:[#allocation7 + $0x140] sm:$0xff]  ;;  %v1761_v33 = vld [vmem:[#allocation7 + $0x138] sm:$0xff] }
 0x62d   :  { %v2869_v37 = vpop.f32.mrf.mxu0 }
 0x62e   :  { %v1711_v47 = vmul.f32 %v2869_v37, %v3641_v0  ;;  %v1756_v37 = vld [vmem:[#allocation7 + $0x110] sm:$0xff] }
 0x62f   :  { %v1586_v38 = vpop.f32.mrf.mxu0 }
 0x630   :  { %v1710_v43 = vmul.f32 %v1586_v38, %v3643_v17  ;;  %v1722_v38 = vld [vmem:[#allocation7] sm:$0xff] }
 0x631   :  { %v2872_v39 = vpop.f32.mrf.mxu0 }
 0x632   :  { %v1713_v44 = vmul.f32 %v2872_v39, %v3651_v25  ;;  %v1753_v25 = vld [vmem:[#allocation7 + $0xf8] sm:$0xff]  ;;  %v1755_v39 = vld [vmem:[#allocation7 + $0x108] sm:$0xff] }
 0x633   :  { %v1596_v41 = vpop.f32.mrf.mxu0 }
 0x634   :  { %v1712_v51 = vmul.f32 %v1596_v41, %v3653_v26  ;;  %v1752_v26 = vld [vmem:[#allocation7 + $0xf0] sm:$0xff]  ;;  %v1754_v41 = vld [vmem:[#allocation7 + $0x100] sm:$0xff] }
 0x655   :  { %v1612_v34 = vpop.permute.xlu1 %1611  ;;  %v1610_v35 = vpop.permute.xlu0 %1609 }
 0x656   :  { %2875 = vmatprep.mubr.msk.f32.mxu1 %vm1507_vm5, %v1610_v35  ;;  %v1759_v35 = vld [vmem:[#allocation7 + $0x128] sm:$0xff] }
 0x657   :  { %2876 = vmatmul.mubr.msk.f32.vlgmr.msra.gmra.mxu1 %vm1507_vm5, %v1612_v34  ;;  %v1760_v34 = vld [vmem:[#allocation7 + $0x130] sm:$0xff] }
 0x659   :  { %v1616_v45 = vpop.permute.xlu1 %1615  ;;  %v1614_v36 = vpop.permute.xlu0 %1613 }
 0x65a   :  { %2878 = vmatprep.mubr.msk.f32.mxu1 %vm1507_vm5, %v1614_v36  ;;  %v1757_v36 = vld [vmem:[#allocation7 + $0x118] sm:$0xff] }
 0x65b   :  { %2879 = vmatmul.mubr.msk.f32.gmra.mxu1 %vm1507_vm5, %v1616_v45  ;;  %v1758_v45 = vld [vmem:[#allocation7 + $0x120] sm:$0xff] }
 0x65c   :  { %2903 = vmatprep.mubr.msk.f32.mxu1 %vm323_vm2, %v3480_v10 }
 0x717   :  { %v2877_v40 = vpop.f32.mrf.mxu1 }
 0x718   :  { %v1715_v54 = vadd.f32 %v2877_v40, %v1711_v47  ;;  %v2206_v40 = vld [vmem:[%s3792_s10 + $0x38] sm:$0xff] }
 0x719   :  { %v1691_v42 = vpop.f32.mrf.mxu1 }
 0x71a   :  { %v1714_v56 = vadd.f32 %v1710_v43, %v1691_v42  ;;  %v3711_v0 = vmax.f32 %v1715_v54, 0.0 }
 0x71b   :  { %v2880_v46 = vpop.f32.mrf.mxu1 }
 0x71c   :  { %v1717_v52 = vadd.f32 %v2880_v46, %v1713_v44  ;;  %v1718_v17 = vmax.f32 %v1714_v56, 0.0  ;;  %v2202_v56 = vld [vmem:[%s3792_s10 + $0x18] sm:$0xff] }
 0x71d   :  { %v1701_v53 = vpop.f32.mrf.mxu1 }
 0x71e   :  { %v3703_v55 = vmax.f32 %v1717_v52, 0.0  ;;  %v1716_v10 = vadd.f32 %v1712_v51, %v1701_v53  ;;  %v2205_v51 = vld [vmem:[%s3792_s10 + $0x30] sm:$0xff]  ;;  %v2204_v53 = vld [vmem:[%s3792_s10 + $0x28] sm:$0xff] }
 0x720   :  { %v3705_v57 = vmax.f32 %v1716_v10, 0.0  ;;  %2881 = vmatprep.subr.mxu0 %v3703_v55  ;;  %2895 = vmatprep.subr.mxu1 %v3703_v55 }
 0x721   :  { %2882 = vmatpush3.msra.mxu0 %v3703_v55  ;;  %2896 = vmatpush3.msra.mxu1 %v3703_v55 }
 0x722   :  { %2883 = vmatprep.subr.mxu0 %v3705_v57  ;;  %2897 = vmatprep.subr.mxu1 %v3705_v57 }
 0x723   :  { %2884 = vmatpush3.msra.mxu0 %v3705_v57  ;;  %2898 = vmatpush3.msra.mxu1 %v3705_v57 }
 0x724   :  { %2885 = vmatprep.subr.mxu0 %v3711_v0  ;;  %2899 = vmatprep.subr.mxu1 %v3711_v0 }
 0x725   :  { %2886 = vmatpush3.msra.mxu0 %v3711_v0  ;;  %2900 = vmatpush3.msra.mxu1 %v3711_v0 }
 0x726   :  { %2887 = vmatprep.subr.mxu0 %v1718_v17  ;;  %2901 = vmatprep.subr.mxu1 %v1718_v17 }
 0x727   :  { %2888 = vmatpush3.msra.mxu0 %v1718_v17  ;;  %2902 = vmatpush3.msra.mxu1 %v1718_v17 }
 0x728   :  { %2890 = vmatmul.mubr.msk.f32.vlgmr.msra.gmra.mxu0 %vm323_vm2, %v3470_v4  ;;  %2909 = vmatprep.subr.mxu0 %v1753_v25  ;;  %v1737_v4 = vld [vmem:[#allocation7 + $0x78] sm:$0xff] }
 0x729   :  { %2910 = vmatpush3.msra.mxu0 %v1753_v25  ;;  %2904 = vmatmul.mubr.msk.f32.vlgmr.msra.gmra.mxu1 %vm323_vm2, %v3486_v11  ;;  %v1736_v11 = vld [vmem:[#allocation7 + $0x70] sm:$0xff]  ;;  %v2199_v25 = vld [vmem:[%s3792_s10] sm:$0xff] }
 0x72a   :  { %2911 = vmatprep.subr.mxu0 %v1752_v26  ;;  %2892 = vmatprep.mubr.msk.f32.mxu0 %vm323_vm2, %v3472_v6  ;;  %v1748_v6 = vld [vmem:[#allocation7 + $0xd0] sm:$0xff] }
 0x72b   :  { %2912 = vmatpush3.msra.mxu0 %v1752_v26  ;;  %2906 = vmatprep.mubr.msk.f32.mxu1 %vm323_vm2, %v3491_v13  ;;  %v1735_v13 = vld [vmem:[#allocation7 + $0x68] sm:$0xff] }
 0x72c   :  { %2893 = vmatmul.mubr.msk.f32.gmra.mxu0 %vm323_vm2, %v3478_v7  ;;  %2913 = vmatprep.subr.mxu0 %v1751_v58  ;;  %v1734_v7 = vld [vmem:[#allocation7 + $0x60] sm:$0xff] }
 0x72d   :  { %2914 = vmatpush3.msra.mxu0 %v1751_v58  ;;  %2941 = vmatprep.mubr.f32.mxu0 %v1718_v17  ;;  %v2200_v17 = vld [vmem:[%s3792_s10 + $0x8] sm:$0xff]  ;;  %v3064_v58 = vld [vmem:[%s3782_s0 + $0x10] sm:$0xff] }
 0x72e   :  { %2907 = vmatmul.mubr.msk.f32.gmra.mxu1 %vm323_vm2, %v3500_v15  ;;  %2915 = vmatprep.subr.mxu0 %v1750_v48  ;;  %v1733_v15 = vld [vmem:[#allocation7 + $0x58] sm:$0xff]  ;;  %v3063_v26 = vld [vmem:[%s3782_s0 + $0x8] sm:$0xff] }
 0x72f   :  { %2916 = vmatpush3.msra.mxu0 %v1750_v48  ;;  %2947 = vmatprep.subr.mxu1 %v1737_v4  ;;  %v3065_v48 = vld [vmem:[%s3782_s0 + $0x18] sm:$0xff] }
 0x730   :  { %2917 = vmatprep.subr.mxu0 %v1749_v59  ;;  %2948 = vmatpush3.msra.mxu1 %v1737_v4 }
 0x731   :  { %2918 = vmatpush3.msra.mxu0 %v1749_v59  ;;  %2949 = vmatprep.subr.mxu1 %v1736_v11 }
 0x732   :  { %2919 = vmatprep.subr.mxu0 %v1748_v6  ;;  %2950 = vmatpush3.msra.mxu1 %v1736_v11 }
 0x733   :  { %2920 = vmatpush3.msra.mxu0 %v1748_v6  ;;  %2951 = vmatprep.subr.mxu1 %v1735_v13 }
 0x734   :  { %2921 = vmatprep.subr.mxu0 %v1747_v60  ;;  %2952 = vmatpush3.msra.mxu1 %v1735_v13 }
 0x735   :  { %2922 = vmatpush3.msra.mxu0 %v1747_v60  ;;  %2953 = vmatprep.subr.mxu1 %v1734_v7 }
 0x736   :  { %2923 = vmatprep.subr.mxu0 %v1746_v49  ;;  %2954 = vmatpush3.msra.mxu1 %v1734_v7 }
 0x737   :  { %2924 = vmatpush3.msra.mxu0 %v1746_v49  ;;  %2955 = vmatprep.subr.mxu1 %v1733_v15 }
 0x738   :  { %2925 = vmatprep.subr.mxu0 %v1745_v61  ;;  %2956 = vmatpush3.msra.mxu1 %v1733_v15 }
 0x739   :  { %2926 = vmatpush3.msra.mxu0 %v1745_v61  ;;  %2957 = vmatprep.subr.mxu1 %v1732_v50 }
 0x73a   :  { %2927 = vmatprep.subr.mxu0 %v1744_v62  ;;  %2958 = vmatpush3.msra.mxu1 %v1732_v50 }
 0x73b   :  { %2928 = vmatpush3.msra.mxu0 %v1744_v62  ;;  %2959 = vmatprep.subr.mxu1 %v1731_v63 }
 0x73c   :  { %2929 = vmatprep.subr.mxu0 %v1743_v1  ;;  %2960 = vmatpush3.msra.mxu1 %v1731_v63 }
 0x73d   :  { %2930 = vmatpush3.msra.mxu0 %v1743_v1  ;;  %2961 = vmatprep.subr.mxu1 %v1730_v2 }
 0x73e   :  { %2931 = vmatprep.subr.mxu0 %v1742_v3  ;;  %2962 = vmatpush3.msra.mxu1 %v1730_v2 }
 0x73f   :  { %2932 = vmatpush3.msra.mxu0 %v1742_v3  ;;  %2963 = vmatprep.subr.mxu1 %v1729_v9 }
 0x740   :  { %2933 = vmatprep.subr.mxu0 %v1741_v5  ;;  %2964 = vmatpush3.msra.mxu1 %v1729_v9 }
 0x741   :  { %2934 = vmatpush3.msra.mxu0 %v1741_v5  ;;  %2965 = vmatprep.subr.mxu1 %v1728_v12 }
 0x742   :  { %2935 = vmatprep.subr.mxu0 %v1740_v14  ;;  %2966 = vmatpush3.msra.mxu1 %v1728_v12 }
 0x743   :  { %2936 = vmatpush3.msra.mxu0 %v1740_v14  ;;  %2967 = vmatprep.subr.mxu1 %v1727_v16 }
 0x744   :  { %2937 = vmatprep.subr.mxu0 %v1739_v18  ;;  %2968 = vmatpush3.msra.mxu1 %v1727_v16 }
 0x745   :  { %2938 = vmatpush3.msra.mxu0 %v1739_v18  ;;  %2969 = vmatprep.subr.mxu1 %v1726_v19 }
 0x746   :  { %2939 = vmatprep.subr.mxu0 %v1738_v20  ;;  %2970 = vmatpush3.msra.mxu1 %v1726_v19 }
 0x747   :  { %2940 = vmatpush3.msra.mxu0 %v1738_v20  ;;  %2971 = vmatprep.subr.mxu1 %v1725_v21 }
 0x748   :  { %2942 = vmatmul.mubr.f32.vlgmr.msra.gmra.mxu0 %v3711_v0  ;;  %2985 = vmatprep.subr.mxu0 %v1769_v22  ;;  %v3062_v0 = vld [vmem:[%s3782_s0] sm:$0xff]  ;;  %s3206_s0 = smov [#allocation11]  }
 0x749   :  { %2944 = vmatprep.mubr.f32.mxu0 %v3705_v57  ;;  %2986 = vmatpush3.msra.mxu0 %v1769_v22  ;;  %v2201_v57 = vld [vmem:[%s3792_s10 + $0x10] sm:$0xff] }
 0x74a   :  { %2987 = vmatprep.subr.mxu0 %v1768_v23  ;;  %2972 = vmatpush3.msra.mxu1 %v1725_v21 }
 0x74b   :  { %2988 = vmatpush3.msra.mxu0 %v1768_v23  ;;  %2973 = vmatprep.subr.mxu1 %v1724_v24 }
 0x74c   :  { %2945 = vmatmul.mubr.f32.gmra.mxu0 %v3703_v55  ;;  %2989 = vmatprep.subr.mxu0 %v1767_v8  ;;  %v2203_v55 = vld [vmem:[%s3792_s10 + $0x20] sm:$0xff]  ;;  %s2317_s10 = sshll.u32 %s3206_s0, 4  ;;  %s2318_s10 = int_to_ptr.vmem [resolvable:$true] %s2317_s10 }
 0x74d   :  { %2990 = vmatpush3.msra.mxu0 %v1767_v8  ;;  %2974 = vmatpush3.msra.mxu1 %v1724_v24  ;;  %s3166_s2 = scalar_lea.vmem %s2318_s10, 512  ;;  %p3171_p12 = scmp.lt.s32.totalorder %s2318_s10, %s2318_s10 }
 0x74e   :  { %2991 = vmatprep.subr.mxu0 %v1766_v27  ;;  %2975 = vmatprep.subr.mxu1 %v1723_v28  ;;  %p3167_p11 = scmp.ne.s32.totalorder %s2318_s10, %s3166_s2  ;;  %p3172_p13 = scmp.lt.s32.totalorder %s3166_s2, %s3166_s2 }
 0x74f   :  { %2992 = vmatpush3.msra.mxu0 %v1766_v27  ;;  %2976 = vmatpush3.msra.mxu1 %v1723_v28 }
 0x750   :  { %2993 = vmatprep.subr.mxu0 %v1765_v29  ;;  %2977 = vmatprep.subr.mxu1 %v1722_v38  ;;  %p3173_p0 = por %p3172_p13, %p3171_p12 }
 0x751   :  { %2994 = vmatpush3.msra.mxu0 %v1765_v29  ;;  %2978 = vmatpush3.msra.mxu1 %v1722_v38 }
 0x752   :  { %2995 = vmatprep.subr.mxu0 %v1764_v30  ;;  %3023 = vmatprep.subr.mxu1 %v2206_v40  ;;  %p3174_p1 = pnand %p3173_p0, %p3167_p11 }
 0x753   :  { %2996 = vmatpush3.msra.mxu0 %v1764_v30 }
 0x754   :  { %2997 = vmatprep.subr.mxu0 %v1763_v31 }
 0x755   :  { %2998 = vmatpush3.msra.mxu0 %v1763_v31 }
 0x756   :  { %2999 = vmatprep.subr.mxu0 %v1762_v32 }
 0x757   :  { %3000 = vmatpush3.msra.mxu0 %v1762_v32 }
 0x758   :  { %3001 = vmatprep.subr.mxu0 %v1761_v33 }
 0x759   :  { %3002 = vmatpush3.msra.mxu0 %v1761_v33 }
 0x75a   :  { %3003 = vmatprep.subr.mxu0 %v1760_v34 }
 0x75b   :  { %3004 = vmatpush3.msra.mxu0 %v1760_v34 }
 0x75c   :  { %3005 = vmatprep.subr.mxu0 %v1759_v35 }
 0x75d   :  { %3006 = vmatpush3.msra.mxu0 %v1759_v35 }
 0x75e   :  { %3007 = vmatprep.subr.mxu0 %v1758_v45 }
 0x75f   :  { %3008 = vmatpush3.msra.mxu0 %v1758_v45 }
 0x760   :  { %3009 = vmatprep.subr.mxu0 %v1757_v36 }
 0x761   :  { %3010 = vmatpush3.msra.mxu0 %v1757_v36 }
 0x762   :  { %3011 = vmatprep.subr.mxu0 %v1756_v37 }
 0x763   :  { %3012 = vmatpush3.msra.mxu0 %v1756_v37 }
 0x764   :  { %3013 = vmatprep.subr.mxu0 %v1755_v39 }
 0x765   :  { %3014 = vmatpush3.msra.mxu0 %v1755_v39 }
 0x766   :  { %3015 = vmatprep.subr.mxu0 %v1754_v41 }
 0x767   :  { %3016 = vmatpush3.msra.mxu0 %v1754_v41 }
 0x7e8   :  { %v2891_v42 = vpop.f32.mrf.mxu0 }
 0x7e9   :  { %v2905_v44 = vpop.f32.mrf.mxu1 }
 0x7ea   :  { %v1836_v46 = vpop.f32.mrf.mxu0 }
 0x7eb   :  { %2979 = vmatprep.mubr.f32.mxu1 %v1836_v46  ;;  %v1921_v47 = vpop.f32.mrf.mxu1 }
 0x7ec   :  { %v2894_v52 = vpop.f32.mrf.mxu0  ;;  %2980 = vmatmul.mubr.f32.vlgmr.msra.gmra.mxu1 %v2891_v42  ;;  %3017 = vmatprep.mubr.f32.mxu0 %v1921_v47 }
 0x7ed   :  { %3024 = vmatpush3.msra.mxu1 %v2206_v40  ;;  %3018 = vmatmul.mubr.f32.vlgmr.msra.gmra.mxu0 %v2905_v44 }
 0x7ee   :  { %3025 = vmatprep.subr.mxu1 %v2205_v51  ;;  %v1846_v43 = vpop.f32.mrf.mxu0  ;;  %v2908_v54 = vpop.f32.mrf.mxu1 }
 0x7ef   :  { %3026 = vmatpush3.msra.mxu1 %v2205_v51  ;;  %2982 = vmatprep.mubr.f32.mxu1 %v1846_v43 }
 0x7f0   :  { %3027 = vmatprep.subr.mxu1 %v2204_v53  ;;  %v1931_v10 = vpop.f32.mrf.mxu1  ;;  %2983 = vmatmul.mubr.f32.gmra.mxu1 %v2894_v52 }
 0x7f1   :  { %3028 = vmatpush3.msra.mxu1 %v2204_v53  ;;  %3020 = vmatprep.mubr.f32.mxu0 %v1931_v10 }
 0x7f2   :  { %3029 = vmatprep.subr.mxu1 %v2203_v55  ;;  %3021 = vmatmul.mubr.f32.gmra.mxu0 %v2908_v54 }
 0x7f3   :  { %3030 = vmatpush3.msra.mxu1 %v2203_v55  ;;  %3039 = vmatprep.mubr.msk.f32.mxu1 %vm136_vm1, %v3062_v0 }
 0x7f4   :  { %3031 = vmatprep.subr.mxu1 %v2202_v56 }
 0x7f5   :  { %3032 = vmatpush3.msra.mxu1 %v2202_v56 }
 0x7f6   :  { %3033 = vmatprep.subr.mxu1 %v2201_v57 }
 0x7f7   :  { %3034 = vmatpush3.msra.mxu1 %v2201_v57 }
 0x7f8   :  { %3035 = vmatprep.subr.mxu1 %v2200_v17 }
 0x7f9   :  { %3036 = vmatpush3.msra.mxu1 %v2200_v17 }
 0x7fa   :  { %3037 = vmatprep.subr.mxu1 %v2199_v25 }
 0x7fb   :  { %3038 = vmatpush3.msra.mxu1 %v2199_v25 }
 0x7fc   :  { %3040 = vmatmul.mubr.msk.f32.vlgmr.msra.gmra.mxu1 %vm136_vm1, %v3063_v26 }
 0x7fd   :  { %3042 = vmatprep.mubr.msk.f32.mxu1 %vm136_vm1, %v3064_v58 }
 0x800   :  { %3043 = vmatmul.mubr.msk.f32.gmra.mxu1 %vm136_vm1, %v3065_v48 }
 0x808   :  { %v2943_v4 = vpop.f32.mrf.mxu0 }
 0x80a   :  { %v2006_v59 = vpop.f32.mrf.mxu0 }
 0x80c   :  { %v2946_v11 = vpop.f32.mrf.mxu0 }
 0x80e   :  { %v2016_v13 = vpop.f32.mrf.mxu0 }
 0x8ac   :  { %v2981_v6 = vpop.f32.mrf.mxu1 }
 0x8ad   :  { %v3019_v7 = vpop.f32.mrf.mxu0  ;;  %v2097_v61 = vadd.f32 %v2981_v6, %v2943_v4 }
 0x8ae   :  { %v2091_v60 = vpop.f32.mrf.mxu1 }
 0x8af   :  { %v2176_v15 = vpop.f32.mrf.mxu0  ;;  %v2092_v50 = vadd.f32 %v2091_v60, %v2006_v59  ;;  %v2196_v1 = vadd.f32 %v3019_v7, %v2097_v61 }
 0x8b0   :  { %v2984_v49 = vpop.f32.mrf.mxu1 }
 0x8b1   :  { %v2107_v2 = vadd.f32 %v2984_v49, %v2946_v11  ;;  %v2195_v9 = vadd.f32 %v2176_v15, %v2092_v50 }
 0x8b2   :  { %v2101_v62 = vpop.f32.mrf.mxu1  ;;  %v3022_v63 = vpop.f32.mrf.mxu0 }
 0x8b3   :  { %v2102_v5 = vadd.f32 %v2101_v62, %v2016_v13  ;;  %v2198_v18 = vadd.f32 %v3022_v63, %v2107_v2 }
 0x8b4   :  { %v2186_v14 = vpop.f32.mrf.mxu0 }
 0x8b5   :  { %v2197_v21 = vadd.f32 %v2186_v14, %v2102_v5 }
 0x8bc   :  { %v3041_v3 = vpop.f32.mrf.mxu1 }
 0x8bd   :  { %v2305_v12 = vadd.f32 %v3041_v3, %v2196_v1 }
 0x8be   :  { %v2285_v16 = vpop.f32.mrf.mxu1 }
 0x8bf   :  { %2309 = vst [vmem:[#allocation11 + $0x8] sm:$0xff] %v2305_v12  ;;  %v2304_v19 = vadd.f32 %v2285_v16, %v2195_v9 }
 0x8c0   :  { %v3044_v20 = vpop.f32.mrf.mxu1 }
 0x8c1   :  { %2308 = vst [vmem:[#allocation11] sm:$0xff] %v2304_v19  ;;  %v2307_v22 = vadd.f32 %v3044_v20, %v2198_v18 }
 0x8c2   :  { %v2295_v23 = vpop.f32.mrf.mxu1 }
 0x8c3   :  { %2311 = vst [vmem:[#allocation11 + $0x18] sm:$0xff] %v2307_v22  ;;  %v2306_v24 = vadd.f32 %v2295_v23, %v2197_v21 }
 0x8c5   :  { %2310 = vst [vmem:[#allocation11 + $0x10] sm:$0xff] %v2306_v24 }
 0x8c6   :  { %3177 = shalt.err (!%p3174_p1)
}
 0x8c7   :  { %2323 = dma.vmem_to_hbm [thread:$0]  %s2318_s10, 512, %s3795_s13, [#allocation4], %s3197_s18, %s3197_s18, %s3198_s19  }
 0x8c8   :  { %3192 = dma.done.wait [#allocation4], 512  }
 0x8c9   :  { %3193 = vsyncadd [#allocation4], 4294966784 }
 0x8ca   :  { %2327 = vsyncpa [#allocation3], 1 }
 0x8cb   :  { %2328 = vsyncpa [#allocation6], 1 }
 0x8cc   :  { %2329 = vsyncpa [#allocation9], 1 }
 0x8cd   :  { %2330 = vsyncpa [#allocation4], 1 }

</bundles_post_ra>
